<compile_context>
chip_gen: v5e
topology: v5e:2x2
jax: 0.10.0
libtpu: 0.0.40
codegen_flags: <defaults>
</compile_context>

<pallas_src>
import math

import numpy as np
import jax
import jax.numpy as jnp
from jax.experimental import pallas as pl
from jax.experimental.pallas import tpu as pltpu


def _gelu(x):
    # tanh-approx GELU (cheap: 1 EUP tanh + a few VALU ops).
    c = math.sqrt(2.0 / math.pi)
    return 0.5 * x * (1.0 + jnp.tanh(c * (x + 0.044715 * x * x * x)))


def _sigmoid(x):
    return 1.0 / (1.0 + jnp.exp(-x))


def _fno_kernel(seq_ref, wih_ref, whh_ref, bias_ref,
                e_ref, eb_ref,
                m_ref, mb_ref,
                f1_ref, f1b_ref, f2_ref, f2b_ref,
                out_ref):
    B, N = out_ref.shape            # batch, spatial (= state_dim)
    S = whh_ref.shape[0]            # hidden = state_dim
    L = m_ref.shape[0]              # number of FNO blocks (4)
    W = f1_ref.shape[0]             # FNO width (channels)
    T = seq_ref.shape[0] // B       # sequence length (time-major flattening)

    # ----------------- LSTM encoder (keep only last hidden state) -----------------
    # Input projection hoisted OFF the serial h-chain: one (T*B, F) x (F, 4S) matmul.
    pre_all = jnp.dot(seq_ref[...], wih_ref[...],
                      preferred_element_type=jnp.float32) + bias_ref[...]   # (T*B, 4S)

    whh = whh_ref[...]              # (S, 4S) f32 — the only matmul left on the h-chain
    h = jnp.zeros((B, S), jnp.float32)
    c = jnp.zeros((B, S), jnp.float32)
    for t in range(T):              # fully unrolled (T static & small)
        gates = pre_all[t * B:(t + 1) * B, :] + jnp.dot(
            h, whh, preferred_element_type=jnp.float32)                     # (B, 4S)
        # One EUP pass over the whole (single-vreg) gate tile; the lanes covering
        # the g-gate are lockstep-free so no extra cost.
        sig = _sigmoid(gates)
        i_g = sig[:, 0:S]
        f_g = sig[:, S:2 * S]
        o_g = sig[:, 3 * S:4 * S]
        g_g = jnp.tanh(gates[:, 2 * S:3 * S])
        c = f_g * c + i_g * g_g
        h = o_g * jnp.tanh(c)

    # ----------------- fc0 folded into an (N, N*W) bf16 expansion matrix ----------
    x = jnp.dot(h.astype(jnp.bfloat16), e_ref[...],
                preferred_element_type=jnp.float32) + eb_ref[...]           # (B, N*W) f32

    # ----------------- 4 FNO blocks: one fused bf16 (N*W, N*W) operator each ------
    # M_l = rDFT -> per-mode complex channel mix -> inverse rDFT  +  I_N (x) conv1x1
    for l in range(L):
        x = jnp.dot(x.astype(jnp.bfloat16), m_ref[l],
                    preferred_element_type=jnp.float32) + mb_ref[l]
        if l < L - 1:               # last block has no GELU (matches torch forward)
            x = _gelu(x)

    # ----------------- head: shared (W,128)/(128,1) fc1/fc2 per spatial position --
    # Block-diagonal zero-padded head matrices removed (review): ~1 MiB less DMA.
    fc1w = f1_ref[...]              # (W, 128) bf16
    fc1b = f1b_ref[...]             # (1, 128) f32
    fc2w = f2_ref[...]              # (1, 128) f32
    f2b = f2b_ref[...]              # (1, 1)   f32
    xb = x.astype(jnp.bfloat16)
    for n in range(N):              # N=8 independent, fully-unrolled tiny chains
        xn = xb[:, n * W:(n + 1) * W]                                       # (B, W)
        h1 = jnp.dot(xn, fc1w, preferred_element_type=jnp.float32) + fc1b   # (B, 128)
        h1 = _gelu(h1)
        # fc2 as VPU multiply + XLU lane-reduce (keeps it off the MXU)
        out_ref[:, n:n + 1] = jnp.sum(h1 * fc2w, axis=1, keepdims=True) + f2b


def init_params(key, state_dim, control_dim, modes, width):
    S, Ctl, K, Wd = state_dim, control_dim, modes, width
    ks = jax.random.split(key, 16)

    def u(k, shape, lim):
        return jax.random.uniform(k, shape, jnp.float32, -lim, lim)

    klstm = 1.0 / math.sqrt(S)
    params = {
        "wih": u(ks[0], (4 * S, S + Ctl), klstm),
        "whh": u(ks[1], (4 * S, S), klstm),
        "bih": u(ks[2], (4 * S,), klstm),
        "bhh": u(ks[3], (4 * S,), klstm),
        "fc0w": u(ks[4], (Wd, 1), 1.0),
        "fc0b": u(ks[5], (Wd,), 1.0),
        # spectral weights stored as (layer, mode, in, out), real / imag parts
        "swr": (1.0 / (Wd * Wd)) * jax.random.uniform(ks[6], (4, K, Wd, Wd), jnp.float32),
        "swi": (1.0 / (Wd * Wd)) * jax.random.uniform(ks[7], (4, K, Wd, Wd), jnp.float32),
        # pointwise conv1d (kernel=1) weights stored as (layer, in, out)
        "pww": u(ks[8], (4, Wd, Wd), 1.0 / math.sqrt(Wd)),
        "pwb": u(ks[9], (4, Wd), 1.0 / math.sqrt(Wd)),
        "fc1w": u(ks[10], (128, Wd), 1.0 / math.sqrt(Wd)),
        "fc1b": u(ks[11], (128,), 1.0 / math.sqrt(Wd)),
        "fc2w": u(ks[12], (1, 128), 1.0 / math.sqrt(128)),
        "fc2b": u(ks[13], (1,), 1.0 / math.sqrt(128)),
    }
    return params


def build_operators(params, state_dim, modes):
    """Host-side (numpy) precompute of all fused operators. Done once."""
    N, K = state_dim, modes
    assert K <= N // 2 + 1, "modes must be <= state_dim//2 + 1 (rfft truncation)"
    p = {k: np.asarray(v, np.float64) for k, v in params.items()}
    Wd = p["fc0w"].shape[0]
    L = p["swr"].shape[0]

    # truncated real-DFT forward / inverse matrices (matches rfft/irfft with only
    # the first `modes` frequencies kept, rest zeroed)
    n = np.arange(N, dtype=np.float64)
    k = np.arange(K, dtype=np.float64)
    ang = 2.0 * math.pi * np.outer(k, n) / N          # (K, N)
    fr, fi = np.cos(ang), -np.sin(ang)
    ck = np.where((np.arange(K) == 0) | (2 * np.arange(K) == N), 1.0, 2.0)
    icr = (ck[:, None] / N) * np.cos(ang)
    ici = -(ck[:, None] / N) * np.sin(ang)

    # fused spectral operator per layer
    ar = np.einsum('kn,lkio->lknio', fr, p["swr"]) - np.einsum('kn,lkio->lknio', fi, p["swi"])
    ai = np.einsum('kn,lkio->lknio', fr, p["swi"]) + np.einsum('kn,lkio->lknio', fi, p["swr"])
    m_spec = np.einsum('km,lknio->lnimo', icr, ar) + np.einsum('km,lknio->lnimo', ici, ai)
    # pointwise conv folded in: I_N (x) pww[l]
    m_pw = np.einsum('nm,lio->lnimo', np.eye(N), p["pww"])
    M = (m_spec + m_pw).reshape(L, N * Wd, N * Wd)
    Mb = np.tile(p["pwb"], (1, N)).reshape(L, 1, N * Wd)

    # fc0 folded into (N, N*W) expansion: x2d[b, n*W+w] = hn[b,n]*fc0w[w] + fc0b[w]
    E = np.einsum('nm,w->nmw', np.eye(N), p["fc0w"].reshape(Wd)).reshape(N, N * Wd)
    Eb = np.tile(p["fc0b"], N).reshape(1, N * Wd)

    ops = {
        "wih_t": jnp.asarray(p["wih"].T, jnp.float32),            # (S+Ctl, 4S)
        "whh_t": jnp.asarray(p["whh"].T, jnp.float32),            # (S, 4S)
        "bias": jnp.asarray((p["bih"] + p["bhh"]).reshape(1, -1), jnp.float32),
        # big operators in bf16 (kernel is weight-DMA bound); biases stay f32
        "E": jnp.asarray(E, jnp.bfloat16),
        "Eb": jnp.asarray(Eb, jnp.float32),
        "M": jnp.asarray(M, jnp.bfloat16),
        "Mb": jnp.asarray(Mb, jnp.float32),
        # shared (non-block-diagonal) head weights
        "f1w": jnp.asarray(p["fc1w"].T, jnp.bfloat16),            # (W, 128)
        "f1b": jnp.asarray(p["fc1b"].reshape(1, -1), jnp.float32),
        "f2w": jnp.asarray(p["fc2w"].reshape(1, -1), jnp.float32),  # (1, 128)
        "f2b": jnp.asarray(p["fc2b"].reshape(1, 1), jnp.float32),
    }
    return ops


def fno_forward(traj, state, control, ops):
    if state.ndim == 2:
        state = state[:, None, :]
        control = control[:, None, :]
    vec = jnp.concatenate([state, control], axis=-1)            # (B, 1, S+Ctl)
    seq = jnp.concatenate([traj, vec], axis=1)                  # (B, T, S+Ctl)
    seq = jnp.transpose(seq, (1, 0, 2)).astype(jnp.float32)     # (T, B, S+Ctl)
    T, B, F = seq.shape
    seq2d = seq.reshape(T * B, F)                               # time-major flatten (host side)

    N = ops["E"].shape[0]

    inputs = (seq2d, ops["wih_t"], ops["whh_t"], ops["bias"],
              ops["E"], ops["Eb"], ops["M"], ops["Mb"],
              ops["f1w"], ops["f1b"], ops["f2w"], ops["f2b"])

    vmem = pl.BlockSpec(memory_space=pltpu.MemorySpace.VMEM)
    # TODO(synk): for autoregressive rollouts / repeated calls, add an "arbitrary"
    #             grid axis over steps with constant index_maps on the weight specs
    #             so the ~0.5 MiB of bf16 operators stays VMEM-resident across steps.
    # TODO(synk): at larger batch, tile B with a grid + dimension_semantics=("parallel",)
    #             so both v7x TensorCores are used; B=2 cannot be split under the
    #             (8,128) block-shape constraint, so this call stays gridless.
    out = pl.pallas_call(
        _fno_kernel,
        out_shape=jax.ShapeDtypeStruct((B, N), jnp.float32),    # lane-dense output
        in_specs=[vmem] * len(inputs),
        out_specs=vmem,
    )(*inputs)
    return out                                                  # (B, state_dim)


if __name__ == "__main__":
    state_dim, control_dim, modes, width = 8, 2, 4, 32
    B, T_minus_1 = 2, 7

    key = jax.random.PRNGKey(0)
    kp, kt, ks, kc = jax.random.split(key, 4)
    params = init_params(kp, state_dim, control_dim, modes, width)
    ops = build_operators(params, state_dim, modes)

    traj = jax.random.normal(kt, (B, T_minus_1, state_dim + control_dim), jnp.float32)
    state = jax.random.normal(ks, (B, 1, state_dim), jnp.float32)
    control = jax.random.normal(kc, (B, 1, control_dim), jnp.float32)

    out = fno_forward(traj, state, control, ops)
    jax.block_until_ready(out)
    assert out.shape == (B, state_dim) and out.dtype == jnp.float32
    assert bool(jnp.all(jnp.isfinite(out)))
    print("KERNEL_OK")
</pallas_src>

<mosaic_0001>
module attributes {stable_mosaic.version = 11 : i64} {
  func.func @_fno_kernel(%arg0: memref<16x10xf32, #tpu.memory_space<vmem>>, %arg1: memref<10x32xf32, #tpu.memory_space<vmem>>, %arg2: memref<8x32xf32, #tpu.memory_space<vmem>>, %arg3: memref<1x32xf32, #tpu.memory_space<vmem>>, %arg4: memref<8x256xbf16, #tpu.memory_space<vmem>>, %arg5: memref<1x256xf32, #tpu.memory_space<vmem>>, %arg6: memref<4x256x256xbf16, #tpu.memory_space<vmem>>, %arg7: memref<4x1x256xf32, #tpu.memory_space<vmem>>, %arg8: memref<32x128xbf16, #tpu.memory_space<vmem>>, %arg9: memref<1x128xf32, #tpu.memory_space<vmem>>, %arg10: memref<1x128xf32, #tpu.memory_space<vmem>>, %arg11: memref<1x1xf32, #tpu.memory_space<vmem>>, %arg12: memref<2x8xf32, #tpu.memory_space<vmem>>) attributes {dimension_semantics = [], scalar_prefetch = 0 : i64, scratch_operands = 0 : i64, tpu.core_type = #tpu.core_type<tc>} {
    %c0 = arith.constant 0 : index
    %c0_0 = arith.constant 0 : index
    %0 = vector.load %arg0[%c0, %c0_0] : memref<16x10xf32, #tpu.memory_space<vmem>>, vector<16x10xf32>
    %c0_1 = arith.constant 0 : index
    %c0_2 = arith.constant 0 : index
    %1 = vector.load %arg1[%c0_1, %c0_2] : memref<10x32xf32, #tpu.memory_space<vmem>>, vector<10x32xf32>
    %cst = arith.constant dense<0.000000e+00> : vector<16x32xf32>
    %2 = tpu.matmul %0, %1, %cst {dimension_numbers = #tpu.dot_dimension_numbers<[1], [0], [0], [1], [0, 0, 1, 1], [], []>} : vector<16x10xf32>, vector<10x32xf32>, vector<16x32xf32> -> vector<16x32xf32>
    %c0_3 = arith.constant 0 : index
    %c0_4 = arith.constant 0 : index
    %3 = vector.load %arg3[%c0_3, %c0_4] : memref<1x32xf32, #tpu.memory_space<vmem>>, vector<1x32xf32>
    %4 = vector.broadcast %3 : vector<1x32xf32> to vector<16x32xf32>
    %5 = arith.addf %2, %4 : vector<16x32xf32>
    %c0_5 = arith.constant 0 : index
    %c0_6 = arith.constant 0 : index
    %6 = vector.load %arg2[%c0_5, %c0_6] : memref<8x32xf32, #tpu.memory_space<vmem>>, vector<8x32xf32>
    %cst_7 = arith.constant 0.000000e+00 : f32
    %7 = vector.broadcast %cst_7 : f32 to vector<2x8xf32>
    %cst_8 = arith.constant 0.000000e+00 : f32
    %8 = vector.broadcast %cst_8 : f32 to vector<2x8xf32>
    %9 = vector.extract_strided_slice %5 {offsets = [0, 0], sizes = [2, 32], strides = [1, 1]} : vector<16x32xf32> to vector<2x32xf32>
    %cst_9 = arith.constant dense<0.000000e+00> : vector<2x32xf32>
    %10 = tpu.matmul %7, %6, %cst_9 {dimension_numbers = #tpu.dot_dimension_numbers<[1], [0], [0], [1], [0, 0, 1, 1], [], []>} : vector<2x8xf32>, vector<8x32xf32>, vector<2x32xf32> -> vector<2x32xf32>
    %11 = arith.addf %9, %10 : vector<2x32xf32>
    %cst_10 = arith.constant 0.000000e+00 : f32
    %12 = vector.broadcast %cst_10 : f32 to vector<2x32xf32>
    %13 = arith.subf %12, %11 : vector<2x32xf32>
    %14 = math.exp %13 : vector<2x32xf32>
    %cst_11 = arith.constant 1.000000e+00 : f32
    %15 = vector.broadcast %cst_11 : f32 to vector<2x32xf32>
    %16 = arith.addf %15, %14 : vector<2x32xf32>
    %cst_12 = arith.constant 1.000000e+00 : f32
    %17 = vector.broadcast %cst_12 : f32 to vector<2x32xf32>
    %18 = arith.divf %17, %16 : vector<2x32xf32>
    %19 = vector.extract_strided_slice %18 {offsets = [0, 0], sizes = [2, 8], strides = [1, 1]} : vector<2x32xf32> to vector<2x8xf32>
    %20 = vector.extract_strided_slice %18 {offsets = [0, 8], sizes = [2, 8], strides = [1, 1]} : vector<2x32xf32> to vector<2x8xf32>
    %21 = vector.extract_strided_slice %18 {offsets = [0, 24], sizes = [2, 8], strides = [1, 1]} : vector<2x32xf32> to vector<2x8xf32>
    %22 = vector.extract_strided_slice %11 {offsets = [0, 16], sizes = [2, 8], strides = [1, 1]} : vector<2x32xf32> to vector<2x8xf32>
    %23 = math.tanh %22 : vector<2x8xf32>
    %24 = arith.mulf %20, %8 : vector<2x8xf32>
    %25 = arith.mulf %19, %23 : vector<2x8xf32>
    %26 = arith.addf %24, %25 : vector<2x8xf32>
    %27 = math.tanh %26 : vector<2x8xf32>
    %28 = arith.mulf %21, %27 : vector<2x8xf32>
    %29 = vector.extract_strided_slice %5 {offsets = [2, 0], sizes = [2, 32], strides = [1, 1]} : vector<16x32xf32> to vector<2x32xf32>
    %cst_13 = arith.constant dense<0.000000e+00> : vector<2x32xf32>
    %30 = tpu.matmul %28, %6, %cst_13 {dimension_numbers = #tpu.dot_dimension_numbers<[1], [0], [0], [1], [0, 0, 1, 1], [], []>} : vector<2x8xf32>, vector<8x32xf32>, vector<2x32xf32> -> vector<2x32xf32>
    %31 = arith.addf %29, %30 : vector<2x32xf32>
    %cst_14 = arith.constant 0.000000e+00 : f32
    %32 = vector.broadcast %cst_14 : f32 to vector<2x32xf32>
    %33 = arith.subf %32, %31 : vector<2x32xf32>
    %34 = math.exp %33 : vector<2x32xf32>
    %cst_15 = arith.constant 1.000000e+00 : f32
    %35 = vector.broadcast %cst_15 : f32 to vector<2x32xf32>
    %36 = arith.addf %35, %34 : vector<2x32xf32>
    %cst_16 = arith.constant 1.000000e+00 : f32
    %37 = vector.broadcast %cst_16 : f32 to vector<2x32xf32>
    %38 = arith.divf %37, %36 : vector<2x32xf32>
    %39 = vector.extract_strided_slice %38 {offsets = [0, 0], sizes = [2, 8], strides = [1, 1]} : vector<2x32xf32> to vector<2x8xf32>
    %40 = vector.extract_strided_slice %38 {offsets = [0, 8], sizes = [2, 8], strides = [1, 1]} : vector<2x32xf32> to vector<2x8xf32>
    %41 = vector.extract_strided_slice %38 {offsets = [0, 24], sizes = [2, 8], strides = [1, 1]} : vector<2x32xf32> to vector<2x8xf32>
    %42 = vector.extract_strided_slice %31 {offsets = [0, 16], sizes = [2, 8], strides = [1, 1]} : vector<2x32xf32> to vector<2x8xf32>
    %43 = math.tanh %42 : vector<2x8xf32>
    %44 = arith.mulf %40, %26 : vector<2x8xf32>
    %45 = arith.mulf %39, %43 : vector<2x8xf32>
    %46 = arith.addf %44, %45 : vector<2x8xf32>
    %47 = math.tanh %46 : vector<2x8xf32>
    %48 = arith.mulf %41, %47 : vector<2x8xf32>
    %49 = vector.extract_strided_slice %5 {offsets = [4, 0], sizes = [2, 32], strides = [1, 1]} : vector<16x32xf32> to vector<2x32xf32>
    %cst_17 = arith.constant dense<0.000000e+00> : vector<2x32xf32>
    %50 = tpu.matmul %48, %6, %cst_17 {dimension_numbers = #tpu.dot_dimension_numbers<[1], [0], [0], [1], [0, 0, 1, 1], [], []>} : vector<2x8xf32>, vector<8x32xf32>, vector<2x32xf32> -> vector<2x32xf32>
    %51 = arith.addf %49, %50 : vector<2x32xf32>
    %cst_18 = arith.constant 0.000000e+00 : f32
    %52 = vector.broadcast %cst_18 : f32 to vector<2x32xf32>
    %53 = arith.subf %52, %51 : vector<2x32xf32>
    %54 = math.exp %53 : vector<2x32xf32>
    %cst_19 = arith.constant 1.000000e+00 : f32
    %55 = vector.broadcast %cst_19 : f32 to vector<2x32xf32>
    %56 = arith.addf %55, %54 : vector<2x32xf32>
    %cst_20 = arith.constant 1.000000e+00 : f32
    %57 = vector.broadcast %cst_20 : f32 to vector<2x32xf32>
    %58 = arith.divf %57, %56 : vector<2x32xf32>
    %59 = vector.extract_strided_slice %58 {offsets = [0, 0], sizes = [2, 8], strides = [1, 1]} : vector<2x32xf32> to vector<2x8xf32>
    %60 = vector.extract_strided_slice %58 {offsets = [0, 8], sizes = [2, 8], strides = [1, 1]} : vector<2x32xf32> to vector<2x8xf32>
    %61 = vector.extract_strided_slice %58 {offsets = [0, 24], sizes = [2, 8], strides = [1, 1]} : vector<2x32xf32> to vector<2x8xf32>
    %62 = vector.extract_strided_slice %51 {offsets = [0, 16], sizes = [2, 8], strides = [1, 1]} : vector<2x32xf32> to vector<2x8xf32>
    %63 = math.tanh %62 : vector<2x8xf32>
    %64 = arith.mulf %60, %46 : vector<2x8xf32>
    %65 = arith.mulf %59, %63 : vector<2x8xf32>
    %66 = arith.addf %64, %65 : vector<2x8xf32>
    %67 = math.tanh %66 : vector<2x8xf32>
    %68 = arith.mulf %61, %67 : vector<2x8xf32>
    %69 = vector.extract_strided_slice %5 {offsets = [6, 0], sizes = [2, 32], strides = [1, 1]} : vector<16x32xf32> to vector<2x32xf32>
    %cst_21 = arith.constant dense<0.000000e+00> : vector<2x32xf32>
    %70 = tpu.matmul %68, %6, %cst_21 {dimension_numbers = #tpu.dot_dimension_numbers<[1], [0], [0], [1], [0, 0, 1, 1], [], []>} : vector<2x8xf32>, vector<8x32xf32>, vector<2x32xf32> -> vector<2x32xf32>
    %71 = arith.addf %69, %70 : vector<2x32xf32>
    %cst_22 = arith.constant 0.000000e+00 : f32
    %72 = vector.broadcast %cst_22 : f32 to vector<2x32xf32>
    %73 = arith.subf %72, %71 : vector<2x32xf32>
    %74 = math.exp %73 : vector<2x32xf32>
    %cst_23 = arith.constant 1.000000e+00 : f32
    %75 = vector.broadcast %cst_23 : f32 to vector<2x32xf32>
    %76 = arith.addf %75, %74 : vector<2x32xf32>
    %cst_24 = arith.constant 1.000000e+00 : f32
    %77 = vector.broadcast %cst_24 : f32 to vector<2x32xf32>
    %78 = arith.divf %77, %76 : vector<2x32xf32>
    %79 = vector.extract_strided_slice %78 {offsets = [0, 0], sizes = [2, 8], strides = [1, 1]} : vector<2x32xf32> to vector<2x8xf32>
    %80 = vector.extract_strided_slice %78 {offsets = [0, 8], sizes = [2, 8], strides = [1, 1]} : vector<2x32xf32> to vector<2x8xf32>
    %81 = vector.extract_strided_slice %78 {offsets = [0, 24], sizes = [2, 8], strides = [1, 1]} : vector<2x32xf32> to vector<2x8xf32>
    %82 = vector.extract_strided_slice %71 {offsets = [0, 16], sizes = [2, 8], strides = [1, 1]} : vector<2x32xf32> to vector<2x8xf32>
    %83 = math.tanh %82 : vector<2x8xf32>
    %84 = arith.mulf %80, %66 : vector<2x8xf32>
    %85 = arith.mulf %79, %83 : vector<2x8xf32>
    %86 = arith.addf %84, %85 : vector<2x8xf32>
    %87 = math.tanh %86 : vector<2x8xf32>
    %88 = arith.mulf %81, %87 : vector<2x8xf32>
    %89 = vector.extract_strided_slice %5 {offsets = [8, 0], sizes = [2, 32], strides = [1, 1]} : vector<16x32xf32> to vector<2x32xf32>
    %cst_25 = arith.constant dense<0.000000e+00> : vector<2x32xf32>
    %90 = tpu.matmul %88, %6, %cst_25 {dimension_numbers = #tpu.dot_dimension_numbers<[1], [0], [0], [1], [0, 0, 1, 1], [], []>} : vector<2x8xf32>, vector<8x32xf32>, vector<2x32xf32> -> vector<2x32xf32>
    %91 = arith.addf %89, %90 : vector<2x32xf32>
    %cst_26 = arith.constant 0.000000e+00 : f32
    %92 = vector.broadcast %cst_26 : f32 to vector<2x32xf32>
    %93 = arith.subf %92, %91 : vector<2x32xf32>
    %94 = math.exp %93 : vector<2x32xf32>
    %cst_27 = arith.constant 1.000000e+00 : f32
    %95 = vector.broadcast %cst_27 : f32 to vector<2x32xf32>
    %96 = arith.addf %95, %94 : vector<2x32xf32>
    %cst_28 = arith.constant 1.000000e+00 : f32
    %97 = vector.broadcast %cst_28 : f32 to vector<2x32xf32>
    %98 = arith.divf %97, %96 : vector<2x32xf32>
    %99 = vector.extract_strided_slice %98 {offsets = [0, 0], sizes = [2, 8], strides = [1, 1]} : vector<2x32xf32> to vector<2x8xf32>
    %100 = vector.extract_strided_slice %98 {offsets = [0, 8], sizes = [2, 8], strides = [1, 1]} : vector<2x32xf32> to vector<2x8xf32>
    %101 = vector.extract_strided_slice %98 {offsets = [0, 24], sizes = [2, 8], strides = [1, 1]} : vector<2x32xf32> to vector<2x8xf32>
    %102 = vector.extract_strided_slice %91 {offsets = [0, 16], sizes = [2, 8], strides = [1, 1]} : vector<2x32xf32> to vector<2x8xf32>
    %103 = math.tanh %102 : vector<2x8xf32>
    %104 = arith.mulf %100, %86 : vector<2x8xf32>
    %105 = arith.mulf %99, %103 : vector<2x8xf32>
    %106 = arith.addf %104, %105 : vector<2x8xf32>
    %107 = math.tanh %106 : vector<2x8xf32>
    %108 = arith.mulf %101, %107 : vector<2x8xf32>
    %109 = vector.extract_strided_slice %5 {offsets = [10, 0], sizes = [2, 32], strides = [1, 1]} : vector<16x32xf32> to vector<2x32xf32>
    %cst_29 = arith.constant dense<0.000000e+00> : vector<2x32xf32>
    %110 = tpu.matmul %108, %6, %cst_29 {dimension_numbers = #tpu.dot_dimension_numbers<[1], [0], [0], [1], [0, 0, 1, 1], [], []>} : vector<2x8xf32>, vector<8x32xf32>, vector<2x32xf32> -> vector<2x32xf32>
    %111 = arith.addf %109, %110 : vector<2x32xf32>
    %cst_30 = arith.constant 0.000000e+00 : f32
    %112 = vector.broadcast %cst_30 : f32 to vector<2x32xf32>
    %113 = arith.subf %112, %111 : vector<2x32xf32>
    %114 = math.exp %113 : vector<2x32xf32>
    %cst_31 = arith.constant 1.000000e+00 : f32
    %115 = vector.broadcast %cst_31 : f32 to vector<2x32xf32>
    %116 = arith.addf %115, %114 : vector<2x32xf32>
    %cst_32 = arith.constant 1.000000e+00 : f32
    %117 = vector.broadcast %cst_32 : f32 to vector<2x32xf32>
    %118 = arith.divf %117, %116 : vector<2x32xf32>
    %119 = vector.extract_strided_slice %118 {offsets = [0, 0], sizes = [2, 8], strides = [1, 1]} : vector<2x32xf32> to vector<2x8xf32>
    %120 = vector.extract_strided_slice %118 {offsets = [0, 8], sizes = [2, 8], strides = [1, 1]} : vector<2x32xf32> to vector<2x8xf32>
    %121 = vector.extract_strided_slice %118 {offsets = [0, 24], sizes = [2, 8], strides = [1, 1]} : vector<2x32xf32> to vector<2x8xf32>
    %122 = vector.extract_strided_slice %111 {offsets = [0, 16], sizes = [2, 8], strides = [1, 1]} : vector<2x32xf32> to vector<2x8xf32>
    %123 = math.tanh %122 : vector<2x8xf32>
    %124 = arith.mulf %120, %106 : vector<2x8xf32>
    %125 = arith.mulf %119, %123 : vector<2x8xf32>
    %126 = arith.addf %124, %125 : vector<2x8xf32>
    %127 = math.tanh %126 : vector<2x8xf32>
    %128 = arith.mulf %121, %127 : vector<2x8xf32>
    %129 = vector.extract_strided_slice %5 {offsets = [12, 0], sizes = [2, 32], strides = [1, 1]} : vector<16x32xf32> to vector<2x32xf32>
    %cst_33 = arith.constant dense<0.000000e+00> : vector<2x32xf32>
    %130 = tpu.matmul %128, %6, %cst_33 {dimension_numbers = #tpu.dot_dimension_numbers<[1], [0], [0], [1], [0, 0, 1, 1], [], []>} : vector<2x8xf32>, vector<8x32xf32>, vector<2x32xf32> -> vector<2x32xf32>
    %131 = arith.addf %129, %130 : vector<2x32xf32>
    %cst_34 = arith.constant 0.000000e+00 : f32
    %132 = vector.broadcast %cst_34 : f32 to vector<2x32xf32>
    %133 = arith.subf %132, %131 : vector<2x32xf32>
    %134 = math.exp %133 : vector<2x32xf32>
    %cst_35 = arith.constant 1.000000e+00 : f32
    %135 = vector.broadcast %cst_35 : f32 to vector<2x32xf32>
    %136 = arith.addf %135, %134 : vector<2x32xf32>
    %cst_36 = arith.constant 1.000000e+00 : f32
    %137 = vector.broadcast %cst_36 : f32 to vector<2x32xf32>
    %138 = arith.divf %137, %136 : vector<2x32xf32>
    %139 = vector.extract_strided_slice %138 {offsets = [0, 0], sizes = [2, 8], strides = [1, 1]} : vector<2x32xf32> to vector<2x8xf32>
    %140 = vector.extract_strided_slice %138 {offsets = [0, 8], sizes = [2, 8], strides = [1, 1]} : vector<2x32xf32> to vector<2x8xf32>
    %141 = vector.extract_strided_slice %138 {offsets = [0, 24], sizes = [2, 8], strides = [1, 1]} : vector<2x32xf32> to vector<2x8xf32>
    %142 = vector.extract_strided_slice %131 {offsets = [0, 16], sizes = [2, 8], strides = [1, 1]} : vector<2x32xf32> to vector<2x8xf32>
    %143 = math.tanh %142 : vector<2x8xf32>
    %144 = arith.mulf %140, %126 : vector<2x8xf32>
    %145 = arith.mulf %139, %143 : vector<2x8xf32>
    %146 = arith.addf %144, %145 : vector<2x8xf32>
    %147 = math.tanh %146 : vector<2x8xf32>
    %148 = arith.mulf %141, %147 : vector<2x8xf32>
    %149 = vector.extract_strided_slice %5 {offsets = [14, 0], sizes = [2, 32], strides = [1, 1]} : vector<16x32xf32> to vector<2x32xf32>
    %cst_37 = arith.constant dense<0.000000e+00> : vector<2x32xf32>
    %150 = tpu.matmul %148, %6, %cst_37 {dimension_numbers = #tpu.dot_dimension_numbers<[1], [0], [0], [1], [0, 0, 1, 1], [], []>} : vector<2x8xf32>, vector<8x32xf32>, vector<2x32xf32> -> vector<2x32xf32>
    %151 = arith.addf %149, %150 : vector<2x32xf32>
    %cst_38 = arith.constant 0.000000e+00 : f32
    %152 = vector.broadcast %cst_38 : f32 to vector<2x32xf32>
    %153 = arith.subf %152, %151 : vector<2x32xf32>
    %154 = math.exp %153 : vector<2x32xf32>
    %cst_39 = arith.constant 1.000000e+00 : f32
    %155 = vector.broadcast %cst_39 : f32 to vector<2x32xf32>
    %156 = arith.addf %155, %154 : vector<2x32xf32>
    %cst_40 = arith.constant 1.000000e+00 : f32
    %157 = vector.broadcast %cst_40 : f32 to vector<2x32xf32>
    %158 = arith.divf %157, %156 : vector<2x32xf32>
    %159 = vector.extract_strided_slice %158 {offsets = [0, 0], sizes = [2, 8], strides = [1, 1]} : vector<2x32xf32> to vector<2x8xf32>
    %160 = vector.extract_strided_slice %158 {offsets = [0, 8], sizes = [2, 8], strides = [1, 1]} : vector<2x32xf32> to vector<2x8xf32>
    %161 = vector.extract_strided_slice %158 {offsets = [0, 24], sizes = [2, 8], strides = [1, 1]} : vector<2x32xf32> to vector<2x8xf32>
    %162 = vector.extract_strided_slice %151 {offsets = [0, 16], sizes = [2, 8], strides = [1, 1]} : vector<2x32xf32> to vector<2x8xf32>
    %163 = math.tanh %162 : vector<2x8xf32>
    %164 = arith.mulf %160, %146 : vector<2x8xf32>
    %165 = arith.mulf %159, %163 : vector<2x8xf32>
    %166 = arith.addf %164, %165 : vector<2x8xf32>
    %167 = math.tanh %166 : vector<2x8xf32>
    %168 = arith.mulf %161, %167 : vector<2x8xf32>
    %169 = arith.truncf %168 : vector<2x8xf32> to vector<2x8xbf16>
    %c0_41 = arith.constant 0 : index
    %c0_42 = arith.constant 0 : index
    %170 = vector.load %arg4[%c0_41, %c0_42] : memref<8x256xbf16, #tpu.memory_space<vmem>>, vector<8x256xbf16>
    %cst_43 = arith.constant dense<0.000000e+00> : vector<2x256xf32>
    %171 = tpu.matmul %169, %170, %cst_43 {dimension_numbers = #tpu.dot_dimension_numbers<[1], [0], [0], [1], [0, 0, 1, 1], [], []>} : vector<2x8xbf16>, vector<8x256xbf16>, vector<2x256xf32> -> vector<2x256xf32>
    %c0_44 = arith.constant 0 : index
    %c0_45 = arith.constant 0 : index
    %172 = vector.load %arg5[%c0_44, %c0_45] : memref<1x256xf32, #tpu.memory_space<vmem>>, vector<1x256xf32>
    %173 = vector.broadcast %172 : vector<1x256xf32> to vector<2x256xf32>
    %174 = arith.addf %171, %173 : vector<2x256xf32>
    %175 = arith.truncf %174 : vector<2x256xf32> to vector<2x256xbf16>
    %c0_46 = arith.constant 0 : index
    %c0_47 = arith.constant 0 : index
    %c0_48 = arith.constant 0 : index
    %176 = vector.load %arg6[%c0_46, %c0_47, %c0_48] : memref<4x256x256xbf16, #tpu.memory_space<vmem>>, vector<1x256x256xbf16>
    %177 = vector.shape_cast %176 : vector<1x256x256xbf16> to vector<256x256xbf16>
    %cst_49 = arith.constant dense<0.000000e+00> : vector<2x256xf32>
    %178 = tpu.matmul %175, %177, %cst_49 {dimension_numbers = #tpu.dot_dimension_numbers<[1], [0], [0], [1], [0, 0, 1, 1], [], []>} : vector<2x256xbf16>, vector<256x256xbf16>, vector<2x256xf32> -> vector<2x256xf32>
    %c0_50 = arith.constant 0 : index
    %c0_51 = arith.constant 0 : index
    %c0_52 = arith.constant 0 : index
    %179 = vector.load %arg7[%c0_50, %c0_51, %c0_52] : memref<4x1x256xf32, #tpu.memory_space<vmem>>, vector<1x1x256xf32>
    %180 = vector.shape_cast %179 : vector<1x1x256xf32> to vector<1x256xf32>
    %181 = vector.broadcast %180 : vector<1x256xf32> to vector<2x256xf32>
    %182 = arith.addf %178, %181 : vector<2x256xf32>
    %cst_53 = arith.constant 5.000000e-01 : f32
    %183 = vector.broadcast %cst_53 : f32 to vector<2x256xf32>
    %184 = arith.mulf %183, %182 : vector<2x256xf32>
    %cst_54 = arith.constant 4.471500e-02 : f32
    %185 = vector.broadcast %cst_54 : f32 to vector<2x256xf32>
    %186 = arith.mulf %185, %182 : vector<2x256xf32>
    %187 = arith.mulf %186, %182 : vector<2x256xf32>
    %188 = arith.mulf %187, %182 : vector<2x256xf32>
    %189 = arith.addf %182, %188 : vector<2x256xf32>
    %cst_55 = arith.constant 0.797884583 : f32
    %190 = vector.broadcast %cst_55 : f32 to vector<2x256xf32>
    %191 = arith.mulf %190, %189 : vector<2x256xf32>
    %192 = math.tanh %191 : vector<2x256xf32>
    %cst_56 = arith.constant 1.000000e+00 : f32
    %193 = vector.broadcast %cst_56 : f32 to vector<2x256xf32>
    %194 = arith.addf %193, %192 : vector<2x256xf32>
    %195 = arith.mulf %184, %194 : vector<2x256xf32>
    %196 = arith.truncf %195 : vector<2x256xf32> to vector<2x256xbf16>
    %c1 = arith.constant 1 : index
    %c0_57 = arith.constant 0 : index
    %c0_58 = arith.constant 0 : index
    %197 = vector.load %arg6[%c1, %c0_57, %c0_58] : memref<4x256x256xbf16, #tpu.memory_space<vmem>>, vector<1x256x256xbf16>
    %198 = vector.shape_cast %197 : vector<1x256x256xbf16> to vector<256x256xbf16>
    %cst_59 = arith.constant dense<0.000000e+00> : vector<2x256xf32>
    %199 = tpu.matmul %196, %198, %cst_59 {dimension_numbers = #tpu.dot_dimension_numbers<[1], [0], [0], [1], [0, 0, 1, 1], [], []>} : vector<2x256xbf16>, vector<256x256xbf16>, vector<2x256xf32> -> vector<2x256xf32>
    %c1_60 = arith.constant 1 : index
    %c0_61 = arith.constant 0 : index
    %c0_62 = arith.constant 0 : index
    %200 = vector.load %arg7[%c1_60, %c0_61, %c0_62] : memref<4x1x256xf32, #tpu.memory_space<vmem>>, vector<1x1x256xf32>
    %201 = vector.shape_cast %200 : vector<1x1x256xf32> to vector<1x256xf32>
    %202 = vector.broadcast %201 : vector<1x256xf32> to vector<2x256xf32>
    %203 = arith.addf %199, %202 : vector<2x256xf32>
    %cst_63 = arith.constant 5.000000e-01 : f32
    %204 = vector.broadcast %cst_63 : f32 to vector<2x256xf32>
    %205 = arith.mulf %204, %203 : vector<2x256xf32>
    %cst_64 = arith.constant 4.471500e-02 : f32
    %206 = vector.broadcast %cst_64 : f32 to vector<2x256xf32>
    %207 = arith.mulf %206, %203 : vector<2x256xf32>
    %208 = arith.mulf %207, %203 : vector<2x256xf32>
    %209 = arith.mulf %208, %203 : vector<2x256xf32>
    %210 = arith.addf %203, %209 : vector<2x256xf32>
    %cst_65 = arith.constant 0.797884583 : f32
    %211 = vector.broadcast %cst_65 : f32 to vector<2x256xf32>
    %212 = arith.mulf %211, %210 : vector<2x256xf32>
    %213 = math.tanh %212 : vector<2x256xf32>
    %cst_66 = arith.constant 1.000000e+00 : f32
    %214 = vector.broadcast %cst_66 : f32 to vector<2x256xf32>
    %215 = arith.addf %214, %213 : vector<2x256xf32>
    %216 = arith.mulf %205, %215 : vector<2x256xf32>
    %217 = arith.truncf %216 : vector<2x256xf32> to vector<2x256xbf16>
    %c2 = arith.constant 2 : index
    %c0_67 = arith.constant 0 : index
    %c0_68 = arith.constant 0 : index
    %218 = vector.load %arg6[%c2, %c0_67, %c0_68] : memref<4x256x256xbf16, #tpu.memory_space<vmem>>, vector<1x256x256xbf16>
    %219 = vector.shape_cast %218 : vector<1x256x256xbf16> to vector<256x256xbf16>
    %cst_69 = arith.constant dense<0.000000e+00> : vector<2x256xf32>
    %220 = tpu.matmul %217, %219, %cst_69 {dimension_numbers = #tpu.dot_dimension_numbers<[1], [0], [0], [1], [0, 0, 1, 1], [], []>} : vector<2x256xbf16>, vector<256x256xbf16>, vector<2x256xf32> -> vector<2x256xf32>
    %c2_70 = arith.constant 2 : index
    %c0_71 = arith.constant 0 : index
    %c0_72 = arith.constant 0 : index
    %221 = vector.load %arg7[%c2_70, %c0_71, %c0_72] : memref<4x1x256xf32, #tpu.memory_space<vmem>>, vector<1x1x256xf32>
    %222 = vector.shape_cast %221 : vector<1x1x256xf32> to vector<1x256xf32>
    %223 = vector.broadcast %222 : vector<1x256xf32> to vector<2x256xf32>
    %224 = arith.addf %220, %223 : vector<2x256xf32>
    %cst_73 = arith.constant 5.000000e-01 : f32
    %225 = vector.broadcast %cst_73 : f32 to vector<2x256xf32>
    %226 = arith.mulf %225, %224 : vector<2x256xf32>
    %cst_74 = arith.constant 4.471500e-02 : f32
    %227 = vector.broadcast %cst_74 : f32 to vector<2x256xf32>
    %228 = arith.mulf %227, %224 : vector<2x256xf32>
    %229 = arith.mulf %228, %224 : vector<2x256xf32>
    %230 = arith.mulf %229, %224 : vector<2x256xf32>
    %231 = arith.addf %224, %230 : vector<2x256xf32>
    %cst_75 = arith.constant 0.797884583 : f32
    %232 = vector.broadcast %cst_75 : f32 to vector<2x256xf32>
    %233 = arith.mulf %232, %231 : vector<2x256xf32>
    %234 = math.tanh %233 : vector<2x256xf32>
    %cst_76 = arith.constant 1.000000e+00 : f32
    %235 = vector.broadcast %cst_76 : f32 to vector<2x256xf32>
    %236 = arith.addf %235, %234 : vector<2x256xf32>
    %237 = arith.mulf %226, %236 : vector<2x256xf32>
    %238 = arith.truncf %237 : vector<2x256xf32> to vector<2x256xbf16>
    %c3 = arith.constant 3 : index
    %c0_77 = arith.constant 0 : index
    %c0_78 = arith.constant 0 : index
    %239 = vector.load %arg6[%c3, %c0_77, %c0_78] : memref<4x256x256xbf16, #tpu.memory_space<vmem>>, vector<1x256x256xbf16>
    %240 = vector.shape_cast %239 : vector<1x256x256xbf16> to vector<256x256xbf16>
    %cst_79 = arith.constant dense<0.000000e+00> : vector<2x256xf32>
    %241 = tpu.matmul %238, %240, %cst_79 {dimension_numbers = #tpu.dot_dimension_numbers<[1], [0], [0], [1], [0, 0, 1, 1], [], []>} : vector<2x256xbf16>, vector<256x256xbf16>, vector<2x256xf32> -> vector<2x256xf32>
    %c3_80 = arith.constant 3 : index
    %c0_81 = arith.constant 0 : index
    %c0_82 = arith.constant 0 : index
    %242 = vector.load %arg7[%c3_80, %c0_81, %c0_82] : memref<4x1x256xf32, #tpu.memory_space<vmem>>, vector<1x1x256xf32>
    %243 = vector.shape_cast %242 : vector<1x1x256xf32> to vector<1x256xf32>
    %244 = vector.broadcast %243 : vector<1x256xf32> to vector<2x256xf32>
    %245 = arith.addf %241, %244 : vector<2x256xf32>
    %c0_83 = arith.constant 0 : index
    %c0_84 = arith.constant 0 : index
    %246 = vector.load %arg8[%c0_83, %c0_84] : memref<32x128xbf16, #tpu.memory_space<vmem>>, vector<32x128xbf16>
    %c0_85 = arith.constant 0 : index
    %c0_86 = arith.constant 0 : index
    %247 = vector.load %arg9[%c0_85, %c0_86] : memref<1x128xf32, #tpu.memory_space<vmem>>, vector<1x128xf32>
    %c0_87 = arith.constant 0 : index
    %c0_88 = arith.constant 0 : index
    %248 = vector.load %arg10[%c0_87, %c0_88] : memref<1x128xf32, #tpu.memory_space<vmem>>, vector<1x128xf32>
    %c0_89 = arith.constant 0 : index
    %c0_90 = arith.constant 0 : index
    %249 = vector.load %arg11[%c0_89, %c0_90] : memref<1x1xf32, #tpu.memory_space<vmem>>, vector<1x1xf32>
    %250 = arith.truncf %245 : vector<2x256xf32> to vector<2x256xbf16>
    %251 = vector.extract_strided_slice %250 {offsets = [0, 0], sizes = [2, 32], strides = [1, 1]} : vector<2x256xbf16> to vector<2x32xbf16>
    %cst_91 = arith.constant dense<0.000000e+00> : vector<2x128xf32>
    %252 = tpu.matmul %251, %246, %cst_91 {dimension_numbers = #tpu.dot_dimension_numbers<[1], [0], [0], [1], [0, 0, 1, 1], [], []>} : vector<2x32xbf16>, vector<32x128xbf16>, vector<2x128xf32> -> vector<2x128xf32>
    %253 = vector.broadcast %247 : vector<1x128xf32> to vector<2x128xf32>
    %254 = arith.addf %252, %253 : vector<2x128xf32>
    %cst_92 = arith.constant 5.000000e-01 : f32
    %255 = vector.broadcast %cst_92 : f32 to vector<2x128xf32>
    %256 = arith.mulf %255, %254 : vector<2x128xf32>
    %cst_93 = arith.constant 4.471500e-02 : f32
    %257 = vector.broadcast %cst_93 : f32 to vector<2x128xf32>
    %258 = arith.mulf %257, %254 : vector<2x128xf32>
    %259 = arith.mulf %258, %254 : vector<2x128xf32>
    %260 = arith.mulf %259, %254 : vector<2x128xf32>
    %261 = arith.addf %254, %260 : vector<2x128xf32>
    %cst_94 = arith.constant 0.797884583 : f32
    %262 = vector.broadcast %cst_94 : f32 to vector<2x128xf32>
    %263 = arith.mulf %262, %261 : vector<2x128xf32>
    %264 = math.tanh %263 : vector<2x128xf32>
    %cst_95 = arith.constant 1.000000e+00 : f32
    %265 = vector.broadcast %cst_95 : f32 to vector<2x128xf32>
    %266 = arith.addf %265, %264 : vector<2x128xf32>
    %267 = arith.mulf %256, %266 : vector<2x128xf32>
    %268 = vector.broadcast %248 : vector<1x128xf32> to vector<2x128xf32>
    %269 = arith.mulf %267, %268 : vector<2x128xf32>
    %cst_96 = arith.constant dense<0.000000e+00> : vector<2xf32>
    %270 = vector.multi_reduction <add>, %269, %cst_96 [1] : vector<2x128xf32> to vector<2xf32>
    %271 = vector.shape_cast %270 : vector<2xf32> to vector<2x1xf32>
    %272 = vector.broadcast %249 : vector<1x1xf32> to vector<2x1xf32>
    %273 = arith.addf %271, %272 : vector<2x1xf32>
    %c0_97 = arith.constant 0 : index
    %c0_98 = arith.constant 0 : index
    %274 = vector.load %arg12[%c0_97, %c0_98] : memref<2x8xf32, #tpu.memory_space<vmem>>, vector<2x1xf32>
    tpu.vector_store %arg12[%c0_97, %c0_98], %273 {strides = array<i32>} : memref<2x8xf32, #tpu.memory_space<vmem>>, vector<2x1xf32>,
    %275 = vector.extract_strided_slice %250 {offsets = [0, 32], sizes = [2, 32], strides = [1, 1]} : vector<2x256xbf16> to vector<2x32xbf16>
    %cst_99 = arith.constant dense<0.000000e+00> : vector<2x128xf32>
    %276 = tpu.matmul %275, %246, %cst_99 {dimension_numbers = #tpu.dot_dimension_numbers<[1], [0], [0], [1], [0, 0, 1, 1], [], []>} : vector<2x32xbf16>, vector<32x128xbf16>, vector<2x128xf32> -> vector<2x128xf32>
    %277 = vector.broadcast %247 : vector<1x128xf32> to vector<2x128xf32>
    %278 = arith.addf %276, %277 : vector<2x128xf32>
    %cst_100 = arith.constant 5.000000e-01 : f32
    %279 = vector.broadcast %cst_100 : f32 to vector<2x128xf32>
    %280 = arith.mulf %279, %278 : vector<2x128xf32>
    %cst_101 = arith.constant 4.471500e-02 : f32
    %281 = vector.broadcast %cst_101 : f32 to vector<2x128xf32>
    %282 = arith.mulf %281, %278 : vector<2x128xf32>
    %283 = arith.mulf %282, %278 : vector<2x128xf32>
    %284 = arith.mulf %283, %278 : vector<2x128xf32>
    %285 = arith.addf %278, %284 : vector<2x128xf32>
    %cst_102 = arith.constant 0.797884583 : f32
    %286 = vector.broadcast %cst_102 : f32 to vector<2x128xf32>
    %287 = arith.mulf %286, %285 : vector<2x128xf32>
    %288 = math.tanh %287 : vector<2x128xf32>
    %cst_103 = arith.constant 1.000000e+00 : f32
    %289 = vector.broadcast %cst_103 : f32 to vector<2x128xf32>
    %290 = arith.addf %289, %288 : vector<2x128xf32>
    %291 = arith.mulf %280, %290 : vector<2x128xf32>
    %292 = vector.broadcast %248 : vector<1x128xf32> to vector<2x128xf32>
    %293 = arith.mulf %291, %292 : vector<2x128xf32>
    %cst_104 = arith.constant dense<0.000000e+00> : vector<2xf32>
    %294 = vector.multi_reduction <add>, %293, %cst_104 [1] : vector<2x128xf32> to vector<2xf32>
    %295 = vector.shape_cast %294 : vector<2xf32> to vector<2x1xf32>
    %296 = vector.broadcast %249 : vector<1x1xf32> to vector<2x1xf32>
    %297 = arith.addf %295, %296 : vector<2x1xf32>
    %c0_105 = arith.constant 0 : index
    %c1_106 = arith.constant 1 : index
    %298 = vector.load %arg12[%c0_105, %c1_106] : memref<2x8xf32, #tpu.memory_space<vmem>>, vector<2x1xf32>
    tpu.vector_store %arg12[%c0_105, %c1_106], %297 {strides = array<i32>} : memref<2x8xf32, #tpu.memory_space<vmem>>, vector<2x1xf32>,
    %299 = vector.extract_strided_slice %250 {offsets = [0, 64], sizes = [2, 32], strides = [1, 1]} : vector<2x256xbf16> to vector<2x32xbf16>
    %cst_107 = arith.constant dense<0.000000e+00> : vector<2x128xf32>
    %300 = tpu.matmul %299, %246, %cst_107 {dimension_numbers = #tpu.dot_dimension_numbers<[1], [0], [0], [1], [0, 0, 1, 1], [], []>} : vector<2x32xbf16>, vector<32x128xbf16>, vector<2x128xf32> -> vector<2x128xf32>
    %301 = vector.broadcast %247 : vector<1x128xf32> to vector<2x128xf32>
    %302 = arith.addf %300, %301 : vector<2x128xf32>
    %cst_108 = arith.constant 5.000000e-01 : f32
    %303 = vector.broadcast %cst_108 : f32 to vector<2x128xf32>
    %304 = arith.mulf %303, %302 : vector<2x128xf32>
    %cst_109 = arith.constant 4.471500e-02 : f32
    %305 = vector.broadcast %cst_109 : f32 to vector<2x128xf32>
    %306 = arith.mulf %305, %302 : vector<2x128xf32>
    %307 = arith.mulf %306, %302 : vector<2x128xf32>
    %308 = arith.mulf %307, %302 : vector<2x128xf32>
    %309 = arith.addf %302, %308 : vector<2x128xf32>
    %cst_110 = arith.constant 0.797884583 : f32
    %310 = vector.broadcast %cst_110 : f32 to vector<2x128xf32>
    %311 = arith.mulf %310, %309 : vector<2x128xf32>
    %312 = math.tanh %311 : vector<2x128xf32>
    %cst_111 = arith.constant 1.000000e+00 : f32
    %313 = vector.broadcast %cst_111 : f32 to vector<2x128xf32>
    %314 = arith.addf %313, %312 : vector<2x128xf32>
    %315 = arith.mulf %304, %314 : vector<2x128xf32>
    %316 = vector.broadcast %248 : vector<1x128xf32> to vector<2x128xf32>
    %317 = arith.mulf %315, %316 : vector<2x128xf32>
    %cst_112 = arith.constant dense<0.000000e+00> : vector<2xf32>
    %318 = vector.multi_reduction <add>, %317, %cst_112 [1] : vector<2x128xf32> to vector<2xf32>
    %319 = vector.shape_cast %318 : vector<2xf32> to vector<2x1xf32>
    %320 = vector.broadcast %249 : vector<1x1xf32> to vector<2x1xf32>
    %321 = arith.addf %319, %320 : vector<2x1xf32>
    %c0_113 = arith.constant 0 : index
    %c2_114 = arith.constant 2 : index
    %322 = vector.load %arg12[%c0_113, %c2_114] : memref<2x8xf32, #tpu.memory_space<vmem>>, vector<2x1xf32>
    tpu.vector_store %arg12[%c0_113, %c2_114], %321 {strides = array<i32>} : memref<2x8xf32, #tpu.memory_space<vmem>>, vector<2x1xf32>,
    %323 = vector.extract_strided_slice %250 {offsets = [0, 96], sizes = [2, 32], strides = [1, 1]} : vector<2x256xbf16> to vector<2x32xbf16>
    %cst_115 = arith.constant dense<0.000000e+00> : vector<2x128xf32>
    %324 = tpu.matmul %323, %246, %cst_115 {dimension_numbers = #tpu.dot_dimension_numbers<[1], [0], [0], [1], [0, 0, 1, 1], [], []>} : vector<2x32xbf16>, vector<32x128xbf16>, vector<2x128xf32> -> vector<2x128xf32>
    %325 = vector.broadcast %247 : vector<1x128xf32> to vector<2x128xf32>
    %326 = arith.addf %324, %325 : vector<2x128xf32>
    %cst_116 = arith.constant 5.000000e-01 : f32
    %327 = vector.broadcast %cst_116 : f32 to vector<2x128xf32>
    %328 = arith.mulf %327, %326 : vector<2x128xf32>
    %cst_117 = arith.constant 4.471500e-02 : f32
    %329 = vector.broadcast %cst_117 : f32 to vector<2x128xf32>
    %330 = arith.mulf %329, %326 : vector<2x128xf32>
    %331 = arith.mulf %330, %326 : vector<2x128xf32>
    %332 = arith.mulf %331, %326 : vector<2x128xf32>
    %333 = arith.addf %326, %332 : vector<2x128xf32>
    %cst_118 = arith.constant 0.797884583 : f32
    %334 = vector.broadcast %cst_118 : f32 to vector<2x128xf32>
    %335 = arith.mulf %334, %333 : vector<2x128xf32>
    %336 = math.tanh %335 : vector<2x128xf32>
    %cst_119 = arith.constant 1.000000e+00 : f32
    %337 = vector.broadcast %cst_119 : f32 to vector<2x128xf32>
    %338 = arith.addf %337, %336 : vector<2x128xf32>
    %339 = arith.mulf %328, %338 : vector<2x128xf32>
    %340 = vector.broadcast %248 : vector<1x128xf32> to vector<2x128xf32>
    %341 = arith.mulf %339, %340 : vector<2x128xf32>
    %cst_120 = arith.constant dense<0.000000e+00> : vector<2xf32>
    %342 = vector.multi_reduction <add>, %341, %cst_120 [1] : vector<2x128xf32> to vector<2xf32>
    %343 = vector.shape_cast %342 : vector<2xf32> to vector<2x1xf32>
    %344 = vector.broadcast %249 : vector<1x1xf32> to vector<2x1xf32>
    %345 = arith.addf %343, %344 : vector<2x1xf32>
    %c0_121 = arith.constant 0 : index
    %c3_122 = arith.constant 3 : index
    %346 = vector.load %arg12[%c0_121, %c3_122] : memref<2x8xf32, #tpu.memory_space<vmem>>, vector<2x1xf32>
    tpu.vector_store %arg12[%c0_121, %c3_122], %345 {strides = array<i32>} : memref<2x8xf32, #tpu.memory_space<vmem>>, vector<2x1xf32>,
    %347 = vector.extract_strided_slice %250 {offsets = [0, 128], sizes = [2, 32], strides = [1, 1]} : vector<2x256xbf16> to vector<2x32xbf16>
    %cst_123 = arith.constant dense<0.000000e+00> : vector<2x128xf32>
    %348 = tpu.matmul %347, %246, %cst_123 {dimension_numbers = #tpu.dot_dimension_numbers<[1], [0], [0], [1], [0, 0, 1, 1], [], []>} : vector<2x32xbf16>, vector<32x128xbf16>, vector<2x128xf32> -> vector<2x128xf32>
    %349 = vector.broadcast %247 : vector<1x128xf32> to vector<2x128xf32>
    %350 = arith.addf %348, %349 : vector<2x128xf32>
    %cst_124 = arith.constant 5.000000e-01 : f32
    %351 = vector.broadcast %cst_124 : f32 to vector<2x128xf32>
    %352 = arith.mulf %351, %350 : vector<2x128xf32>
    %cst_125 = arith.constant 4.471500e-02 : f32
    %353 = vector.broadcast %cst_125 : f32 to vector<2x128xf32>
    %354 = arith.mulf %353, %350 : vector<2x128xf32>
    %355 = arith.mulf %354, %350 : vector<2x128xf32>
    %356 = arith.mulf %355, %350 : vector<2x128xf32>
    %357 = arith.addf %350, %356 : vector<2x128xf32>
    %cst_126 = arith.constant 0.797884583 : f32
    %358 = vector.broadcast %cst_126 : f32 to vector<2x128xf32>
    %359 = arith.mulf %358, %357 : vector<2x128xf32>
    %360 = math.tanh %359 : vector<2x128xf32>
    %cst_127 = arith.constant 1.000000e+00 : f32
    %361 = vector.broadcast %cst_127 : f32 to vector<2x128xf32>
    %362 = arith.addf %361, %360 : vector<2x128xf32>
    %363 = arith.mulf %352, %362 : vector<2x128xf32>
    %364 = vector.broadcast %248 : vector<1x128xf32> to vector<2x128xf32>
    %365 = arith.mulf %363, %364 : vector<2x128xf32>
    %cst_128 = arith.constant dense<0.000000e+00> : vector<2xf32>
    %366 = vector.multi_reduction <add>, %365, %cst_128 [1] : vector<2x128xf32> to vector<2xf32>
    %367 = vector.shape_cast %366 : vector<2xf32> to vector<2x1xf32>
    %368 = vector.broadcast %249 : vector<1x1xf32> to vector<2x1xf32>
    %369 = arith.addf %367, %368 : vector<2x1xf32>
    %c0_129 = arith.constant 0 : index
    %c4 = arith.constant 4 : index
    %370 = vector.load %arg12[%c0_129, %c4] : memref<2x8xf32, #tpu.memory_space<vmem>>, vector<2x1xf32>
    tpu.vector_store %arg12[%c0_129, %c4], %369 {strides = array<i32>} : memref<2x8xf32, #tpu.memory_space<vmem>>, vector<2x1xf32>,
    %371 = vector.extract_strided_slice %250 {offsets = [0, 160], sizes = [2, 32], strides = [1, 1]} : vector<2x256xbf16> to vector<2x32xbf16>
    %cst_130 = arith.constant dense<0.000000e+00> : vector<2x128xf32>
    %372 = tpu.matmul %371, %246, %cst_130 {dimension_numbers = #tpu.dot_dimension_numbers<[1], [0], [0], [1], [0, 0, 1, 1], [], []>} : vector<2x32xbf16>, vector<32x128xbf16>, vector<2x128xf32> -> vector<2x128xf32>
    %373 = vector.broadcast %247 : vector<1x128xf32> to vector<2x128xf32>
    %374 = arith.addf %372, %373 : vector<2x128xf32>
    %cst_131 = arith.constant 5.000000e-01 : f32
    %375 = vector.broadcast %cst_131 : f32 to vector<2x128xf32>
    %376 = arith.mulf %375, %374 : vector<2x128xf32>
    %cst_132 = arith.constant 4.471500e-02 : f32
    %377 = vector.broadcast %cst_132 : f32 to vector<2x128xf32>
    %378 = arith.mulf %377, %374 : vector<2x128xf32>
    %379 = arith.mulf %378, %374 : vector<2x128xf32>
    %380 = arith.mulf %379, %374 : vector<2x128xf32>
    %381 = arith.addf %374, %380 : vector<2x128xf32>
    %cst_133 = arith.constant 0.797884583 : f32
    %382 = vector.broadcast %cst_133 : f32 to vector<2x128xf32>
    %383 = arith.mulf %382, %381 : vector<2x128xf32>
    %384 = math.tanh %383 : vector<2x128xf32>
    %cst_134 = arith.constant 1.000000e+00 : f32
    %385 = vector.broadcast %cst_134 : f32 to vector<2x128xf32>
    %386 = arith.addf %385, %384 : vector<2x128xf32>
    %387 = arith.mulf %376, %386 : vector<2x128xf32>
    %388 = vector.broadcast %248 : vector<1x128xf32> to vector<2x128xf32>
    %389 = arith.mulf %387, %388 : vector<2x128xf32>
    %cst_135 = arith.constant dense<0.000000e+00> : vector<2xf32>
    %390 = vector.multi_reduction <add>, %389, %cst_135 [1] : vector<2x128xf32> to vector<2xf32>
    %391 = vector.shape_cast %390 : vector<2xf32> to vector<2x1xf32>
    %392 = vector.broadcast %249 : vector<1x1xf32> to vector<2x1xf32>
    %393 = arith.addf %391, %392 : vector<2x1xf32>
    %c0_136 = arith.constant 0 : index
    %c5 = arith.constant 5 : index
    %394 = vector.load %arg12[%c0_136, %c5] : memref<2x8xf32, #tpu.memory_space<vmem>>, vector<2x1xf32>
    tpu.vector_store %arg12[%c0_136, %c5], %393 {strides = array<i32>} : memref<2x8xf32, #tpu.memory_space<vmem>>, vector<2x1xf32>,
    %395 = vector.extract_strided_slice %250 {offsets = [0, 192], sizes = [2, 32], strides = [1, 1]} : vector<2x256xbf16> to vector<2x32xbf16>
    %cst_137 = arith.constant dense<0.000000e+00> : vector<2x128xf32>
    %396 = tpu.matmul %395, %246, %cst_137 {dimension_numbers = #tpu.dot_dimension_numbers<[1], [0], [0], [1], [0, 0, 1, 1], [], []>} : vector<2x32xbf16>, vector<32x128xbf16>, vector<2x128xf32> -> vector<2x128xf32>
    %397 = vector.broadcast %247 : vector<1x128xf32> to vector<2x128xf32>
    %398 = arith.addf %396, %397 : vector<2x128xf32>
    %cst_138 = arith.constant 5.000000e-01 : f32
    %399 = vector.broadcast %cst_138 : f32 to vector<2x128xf32>
    %400 = arith.mulf %399, %398 : vector<2x128xf32>
    %cst_139 = arith.constant 4.471500e-02 : f32
    %401 = vector.broadcast %cst_139 : f32 to vector<2x128xf32>
    %402 = arith.mulf %401, %398 : vector<2x128xf32>
    %403 = arith.mulf %402, %398 : vector<2x128xf32>
    %404 = arith.mulf %403, %398 : vector<2x128xf32>
    %405 = arith.addf %398, %404 : vector<2x128xf32>
    %cst_140 = arith.constant 0.797884583 : f32
    %406 = vector.broadcast %cst_140 : f32 to vector<2x128xf32>
    %407 = arith.mulf %406, %405 : vector<2x128xf32>
    %408 = math.tanh %407 : vector<2x128xf32>
    %cst_141 = arith.constant 1.000000e+00 : f32
    %409 = vector.broadcast %cst_141 : f32 to vector<2x128xf32>
    %410 = arith.addf %409, %408 : vector<2x128xf32>
    %411 = arith.mulf %400, %410 : vector<2x128xf32>
    %412 = vector.broadcast %248 : vector<1x128xf32> to vector<2x128xf32>
    %413 = arith.mulf %411, %412 : vector<2x128xf32>
    %cst_142 = arith.constant dense<0.000000e+00> : vector<2xf32>
    %414 = vector.multi_reduction <add>, %413, %cst_142 [1] : vector<2x128xf32> to vector<2xf32>
    %415 = vector.shape_cast %414 : vector<2xf32> to vector<2x1xf32>
    %416 = vector.broadcast %249 : vector<1x1xf32> to vector<2x1xf32>
    %417 = arith.addf %415, %416 : vector<2x1xf32>
    %c0_143 = arith.constant 0 : index
    %c6 = arith.constant 6 : index
    %418 = vector.load %arg12[%c0_143, %c6] : memref<2x8xf32, #tpu.memory_space<vmem>>, vector<2x1xf32>
    tpu.vector_store %arg12[%c0_143, %c6], %417 {strides = array<i32>} : memref<2x8xf32, #tpu.memory_space<vmem>>, vector<2x1xf32>,
    %419 = vector.extract_strided_slice %250 {offsets = [0, 224], sizes = [2, 32], strides = [1, 1]} : vector<2x256xbf16> to vector<2x32xbf16>
    %cst_144 = arith.constant dense<0.000000e+00> : vector<2x128xf32>
    %420 = tpu.matmul %419, %246, %cst_144 {dimension_numbers = #tpu.dot_dimension_numbers<[1], [0], [0], [1], [0, 0, 1, 1], [], []>} : vector<2x32xbf16>, vector<32x128xbf16>, vector<2x128xf32> -> vector<2x128xf32>
    %421 = vector.broadcast %247 : vector<1x128xf32> to vector<2x128xf32>
    %422 = arith.addf %420, %421 : vector<2x128xf32>
    %cst_145 = arith.constant 5.000000e-01 : f32
    %423 = vector.broadcast %cst_145 : f32 to vector<2x128xf32>
    %424 = arith.mulf %423, %422 : vector<2x128xf32>
    %cst_146 = arith.constant 4.471500e-02 : f32
    %425 = vector.broadcast %cst_146 : f32 to vector<2x128xf32>
    %426 = arith.mulf %425, %422 : vector<2x128xf32>
    %427 = arith.mulf %426, %422 : vector<2x128xf32>
    %428 = arith.mulf %427, %422 : vector<2x128xf32>
    %429 = arith.addf %422, %428 : vector<2x128xf32>
    %cst_147 = arith.constant 0.797884583 : f32
    %430 = vector.broadcast %cst_147 : f32 to vector<2x128xf32>
    %431 = arith.mulf %430, %429 : vector<2x128xf32>
    %432 = math.tanh %431 : vector<2x128xf32>
    %cst_148 = arith.constant 1.000000e+00 : f32
    %433 = vector.broadcast %cst_148 : f32 to vector<2x128xf32>
    %434 = arith.addf %433, %432 : vector<2x128xf32>
    %435 = arith.mulf %424, %434 : vector<2x128xf32>
    %436 = vector.broadcast %248 : vector<1x128xf32> to vector<2x128xf32>
    %437 = arith.mulf %435, %436 : vector<2x128xf32>
    %cst_149 = arith.constant dense<0.000000e+00> : vector<2xf32>
    %438 = vector.multi_reduction <add>, %437, %cst_149 [1] : vector<2x128xf32> to vector<2xf32>
    %439 = vector.shape_cast %438 : vector<2xf32> to vector<2x1xf32>
    %440 = vector.broadcast %249 : vector<1x1xf32> to vector<2x1xf32>
    %441 = arith.addf %439, %440 : vector<2x1xf32>
    %c0_150 = arith.constant 0 : index
    %c7 = arith.constant 7 : index
    %442 = vector.load %arg12[%c0_150, %c7] : memref<2x8xf32, #tpu.memory_space<vmem>>, vector<2x1xf32>
    tpu.vector_store %arg12[%c0_150, %c7], %441 {strides = array<i32>} : memref<2x8xf32, #tpu.memory_space<vmem>>, vector<2x1xf32>,
    return
  }
}

</mosaic_0001>

<bundles_post_ra>
// kernel: tpu_custom_call.1
= control target key start
LH: loop header
LB: loop body
LE: loop exit
PB: predicated region body
PF: predicated region fallthrough
CT: control target
= control target key end

     0   :  { %s3506_s0 = inlined_call_operand.hbm [shape: f32[16,10], index: 0, kind: input, shape index: {}]   ;;  %s3507_s1 = inlined_call_operand.hbm [shape: f32[10,32], index: 1, kind: input, shape index: {}]   ;;  %s3508_s2 = inlined_call_operand.hbm [shape: f32[8,32], index: 2, kind: input, shape index: {}]   ;;  %s3509_s3 = inlined_call_operand.hbm [shape: f32[1,32], index: 3, kind: input, shape index: {}]   ;;  %s3510_s4 = inlined_call_operand.hbm [shape: bf16[8,256], index: 4, kind: input, shape index: {}]   ;;  %s3511_s5 = inlined_call_operand.hbm [shape: f32[1,256], index: 5, kind: input, shape index: {}]   ;;  %s3512_s6 = inlined_call_operand.hbm [shape: bf16[4,256,256], index: 6, kind: input, shape index: {}]   ;;  %s3513_s7 = inlined_call_operand.vmem [shape: f32[4,1,256], index: 7, kind: input, shape index: {}]   ;;  %s3514_s8 = inlined_call_operand.hbm [shape: bf16[32,128], index: 8, kind: input, shape index: {}]   ;;  %s3515_s9 = inlined_call_operand.vmem [shape: f32[1,128], index: 9, kind: input, shape index: {}]   ;;  %s3516_s10 = inlined_call_operand.vmem [shape: f32[1,128], index: 10, kind: input, shape index: {}]   ;;  %s3517_s11 = inlined_call_operand.<no memory space> [shape: f32[1,1], index: 11, kind: input, shape index: {}]   ;;  %s3518_s12 = inlined_call_operand.hbm [shape: f32[2,8], index: 12, kind: output, shape index: {}]  }
   0x1   :  { %v17_v0 = vstv %s3517_s11 }
   0x2   :  { %18 = vst [vmem:[#allocation2] sm:$0x1] %v17_v0 }
   0x3   :  { %19 = vsyncpa [#allocation4], 0 }
   0x4   :  { %20 = vsyncpa [#allocation7], 0 }
   0x5   :  { %21 = vsyncpa [#allocation10], 0 }
   0x6   :  { %22 = vsyncpa [#allocation13], 0 }
   0x7   :  { %23 = vsyncpa [#allocation16], 0 }
   0x8   :  { %24 = vsyncpa [#allocation5], 0  ;;  %s42_s25 = sshll.u32 %s3507_s1, 4  ;;  %s3247_s26 = smov [#allocation6]   ;;  %s43_s25 = int_to_ptr.hbm [resolvable:$true] %s42_s25 }
   0x9   :  { %s44_s27 = sshll.u32 %s3247_s26, 4  ;;  %s67_s30 = sshll.u32 %s3509_s3, 4  ;;  %s45_s27 = int_to_ptr.vmem [resolvable:$true] %s44_s27  ;;  %s68_s30 = int_to_ptr.hbm [resolvable:$true] %s67_s30 }
   0xa   :  { %s3248_s11 = smov 128   ;;  %s3249_s13 = smov 8  }
   0xb   :  { %50 = dma.hbm_to_vmem [thread:$0]  %s43_s25, 256, %s45_s27, [#allocation7], %s3248_s11, %s3248_s11, %s3249_s13  }
   0xc   :  { %s3250_s14 = smov [#allocation9]   ;;  %s89_s1 = sshll.u32 %s3511_s5, 4  ;;  %s90_s1 = int_to_ptr.hbm [resolvable:$true] %s89_s1 }
   0xd   :  { %s69_s15 = sshll.u32 %s3250_s14, 4  ;;  %s29_s3 = sshll.u32 %s3506_s0, 4  ;;  %s70_s15 = int_to_ptr.vmem [resolvable:$true] %s69_s15  ;;  %s30_s3 = int_to_ptr.hbm [resolvable:$true] %s29_s3 }
   0xe   :  { %72 = dma.hbm_to_vmem [thread:$0]  %s68_s30, 16, %s70_s15, [#allocation10]  }
   0xf   :  { %s3251_s20 = smov [#allocation12]   ;;  %s3252_s22 = smov [#allocation3]  }
  0x10   :  { %s91_s21 = sshll.u32 %s3251_s20, 4  ;;  %s31_s23 = sshll.u32 %s3252_s22, 4  ;;  %s92_s21 = int_to_ptr.vmem [resolvable:$true] %s91_s21  ;;  %s32_s23 = int_to_ptr.vmem [resolvable:$true] %s31_s23 }
  0x11   :  { %94 = dma.hbm_to_vmem [thread:$0]  %s90_s1, 32, %s92_s21, [#allocation13]  }
  0x12   :  { %s56_s26 = sshll.u32 %s3508_s2, 4  ;;  %s78_s0 = sshll.u32 %s3510_s4, 4  ;;  %s57_s26 = int_to_ptr.hbm [resolvable:$true] %s56_s26  ;;  %s79_s0 = int_to_ptr.hbm [resolvable:$true] %s78_s0 }
  0x13   :  { %37 = dma.hbm_to_vmem [thread:$0]  %s30_s3, 256, %s32_s23, [#allocation4], %s3248_s11, %s3248_s11, %s3249_s13  }
  0x14   :  { %s3253_s28 = smov [#allocation8]   ;;  %s3254_s30 = smov [#allocation11]  }
  0x15   :  { %s58_s29 = sshll.u32 %s3253_s28, 4  ;;  %s80_s14 = sshll.u32 %s3254_s30, 4  ;;  %s59_s29 = int_to_ptr.vmem [resolvable:$true] %s58_s29  ;;  %s81_s14 = int_to_ptr.vmem [resolvable:$true] %s80_s14 }
  0x16   :  { %61 = dma.hbm_to_vmem [thread:$0]  %s57_s26, 128, %s59_s29, [#allocation7]  }
  0x17   :  { %s99_s2 = sshll.u32 %s3512_s6, 4  ;;  %s114_s18 = sshll.u32 %s3514_s8, 4  ;;  %s100_s2 = int_to_ptr.hbm [resolvable:$true] %s99_s2  ;;  %s115_s18 = int_to_ptr.hbm [resolvable:$true] %s114_s18 }
  0x18   :  { %83 = dma.hbm_to_vmem [thread:$0]  %s79_s0, 128, %s81_s14, [#allocation10]  }
  0x19   :  { %s3255_s19 = smov [#allocation14]   ;;  %s3256_s3 = smov [#allocation15]  }
  0x1a   :  { %s101_s4 = sshll.u32 %s3255_s19, 4  ;;  %s116_s20 = sshll.u32 %s3256_s3, 4  ;;  %s102_s4 = int_to_ptr.vmem [resolvable:$true] %s101_s4  ;;  %s117_s20 = int_to_ptr.vmem [resolvable:$true] %s116_s20 }
  0x1b   :  { %107 = dma.hbm_to_vmem [thread:$0]  %s100_s2, 16384, %s102_s4, [#allocation13], %s3248_s11, %s3248_s11, %s3249_s13  }
  0x1c   :  { %s3257_s21 = smov 64   ;;  %s3258_s6 = smov 4  }
  0x1d   :  { %122 = dma.hbm_to_vmem [thread:$0]  %s115_s18, 256, %s117_s20, [#allocation16], %s3257_s21, %s3257_s21, %s3258_s6  }
  0x1e   :  { %3235 = dma.done.wait [#allocation4], 256  }
  0x1f   :  { %3236 = vsyncadd [#allocation4], 4294967040 }
  0x20   :  { %3237 = dma.done.wait [#allocation7], 384  }
  0x21   :  { %3238 = vsyncadd [#allocation7], 4294966912 }
  0x22   :  { %3239 = dma.done.wait [#allocation10], 144  }
  0x23   :  { %3240 = vsyncadd [#allocation10], 4294967152 }
  0x24   :  { %3241 = dma.done.wait [#allocation13], 16416  }
  0x25   :  { %3242 = vsyncadd [#allocation13], 4294950880 }
  0x26   :  { %3243 = dma.done.wait [#allocation16], 256  }
  0x27   :  { %3244 = vsyncadd [#allocation16], 4294967040  ;;  %vm177_vm0 = vcmask 1041408   ;;  %v165_v1 = vld [vmem:[#allocation6 + $0x8] sm:$0x3]  ;;  %v164_v2 = vld [vmem:[#allocation6] sm:$0xff] }
  0x28   :  { %2225 = vmatpush.msk.msra.mxu0 %vm177_vm0, %v165_v1  ;;  %v162_v3 = vld [vmem:[#allocation3] sm:$0xff]  ;;  %vm170_vm1 = vcmask 80896   ;;  %v3259_v5 = vmov 0.0   ;;  %v3378_v6 = vld [vmem:[#allocation9] ss:$0 sm:$0xff]  ;;  %s3260_s8 = smov 112  }
  0x29   :  { %v204_v4 = vld [vmem:[#allocation8] sm:$0xff]  ;;  %s3261_s11 = smov 16   ;;  %s3262_s22 = smov 104   ;;  %vm205_vm6 = vcmask 64512  }
  0x2a   :  { %224 = vmatpush.msra.mxu1 %v204_v4  ;;  %287 = vmatpush.msra.mxu2 %v204_v4  ;;  %s3264_s28 = smov 96   ;;  %s3266_s15 = smov 2  }
  0x2b   :  { %196 = vmatpush.msra.mxu0 %v164_v2  ;;  %225 = vmatmul.f32.vlgmr.msra.gmra.mxu1 %v3259_v5  ;;  %s3267_s16 = smov 1   ;;  %s3268_s2 = smov 5  }
  0x2c   :  { %2226 = vmatmul.msk.f32.vlgmr.msra.gmra.mxu0 %vm170_vm1, %v162_v3  ;;  %357 = vmatpush.msra.mxu3 %v204_v4  ;;  %s3269_s17 = smov 6   ;;  %s3270_s1 = smov 7  }
  0x2d   :  { %427 = vmatpush.msrb.mxu1 %v204_v4  ;;  %497 = vmatpush.msrb.mxu2 %v204_v4  ;;  %s3271_s18 = smov [#allocation17]   ;;  %s2211_s20 = sshll.u32 %s3518_s12, 4  ;;  %s2212_s20 = int_to_ptr.hbm [resolvable:$true] %s2211_s20 }
  0x2e   :  { %563 = vmatpush.msrb.mxu3 %v204_v4  ;;  %s2209_s19 = sshll.u32 %s3271_s18, 4  ;;  %s2210_s19 = int_to_ptr.vmem [resolvable:$true] %s2209_s19 }
  0x2f   :  { %633 = vmatpush.msra.mxu1 %v204_v4 }
  0xa8   :  { %v226_v8 = vpop.f32.mrf.mxu1 }
  0xa9   :  { %v198_v7 = vpop.f32.mrf.mxu0 }
  0xaa   :  { %v3381_v9 = vadd.f32 %v3378_v6, %v198_v7 }
  0xac   :  { %v229_v10 = vadd.f32 %v226_v8, %v3381_v9 }
  0xae   :  { %2927 = vtanh.f32 %v229_v10  ;;  %v230_v12 = vsub.f32 0.0, %v229_v10 }
  0xb0   :  { %v231_v13 = vmul.f32 1.442695, %v230_v12 }
  0xb2   :  { %2929 = vpow2.f32 %v231_v13 }
  0xb4   :  { %v2928_v11 = vpop.eup %2927 }
  0xb5   :  { %252 = vrot.lane.b32.xlu0 %v2928_v11, %s3260_s8 }
  0xb8   :  { %v2930_v14 = vpop.eup %2929 }
  0xb9   :  { %v233_v15 = vadd.f32 1.0, %v2930_v14 }
  0xbb   :  { %2931 = vrcp.f32 %v233_v15  ;;  %v245_v21 = vand.u32 2147483648, %v233_v15  ;;  %vm239_vm3 = vweird.f32 %v233_v15  ;;  %v243_v22 = vand.u32 2147483647, %v233_v15 }
  0xbd   :  { %v246_v24 = vor.u32 1.1754944e-38, %v245_v21  ;;  %vm244_vm5 = vcmp.eq.f32.partialorder %v243_v22, 8.507059e+37 }
  0xc1   :  { %v2932_v16 = vpop.eup %2931 }
  0xc2   :  { %v235_v17 = vmul.f32 %v2932_v16, %v233_v15  ;;  %vm240_vm2 = vweird.f32 %v2932_v16 }
  0xc3   :  { %vm241_vm4 = vmor %vm239_vm3, %vm240_vm2 }
  0xc4   :  { %v236_v18 = vsub.f32 1.0, %v235_v17 }
  0xc6   :  { %v237_v19 = vmul.f32 %v2932_v16, %v236_v18 }
  0xc8   :  { %v238_v20 = vadd.f32 %v2932_v16, %v237_v19 }
  0xca   :  { %v242_v23 = vsel %vm241_vm4, %v2932_v16, %v238_v20 }
  0xcb   :  { %v247_v26 = vsel %vm244_vm5, %v246_v24, %v242_v23 }
  0xcc   :  { %v250_v28 = vmul.f32 0.0, %v247_v26 }
 0x127   :  { %v253_v25 = vpop.permute.xlu0 %252 }
 0x128   :  { %v255_v27 = vmul.f32 %v253_v25, %v247_v26 }
 0x12a   :  { %257 = vrot.lane.b32.xlu0 %v255_v27, %s3249_s13 }
 0x19c   :  { %v258_v29 = vpop.permute.xlu0 %257 }
 0x19d   :  { %v260_v30 = vadd.f32 %v258_v29, %v250_v28 }
 0x19f   :  { %2933 = vtanh.f32 %v260_v30  ;;  %v317_v55 = vrot.slane %v260_v30, 6 }
 0x1a5   :  { %v2934_v31 = vpop.eup %2933 }
 0x1a6   :  { %263 = vrot.lane.b32.xlu1 %v2934_v31, %s3261_s11 }
 0x218   :  { %v264_v32 = vpop.permute.xlu1 %263 }
 0x219   :  { %v266_v33 = vmul.f32 %v264_v32, %v247_v26 }
 0x21b   :  { %268 = vrot.lane.b32.xlu1 %v266_v33, %s3262_s22 }
 0x28d   :  { %v269_v34 = vpop.permute.xlu1 %268 }
 0x28e   :  { %2228 = vmatmul.msk.f32.vlgmr.msra.gmra.mxu2 %vm205_vm6, %v269_v34 }
 0x28f   :  { %703 = vmatpush.msra.mxu2 %v204_v4 }
 0x311   :  { %v289_v35 = vpop.f32.mrf.mxu2 }
 0x312   :  { %v293_v36 = vrot.slane %v289_v35, 6 }
 0x314   :  { %v295_v37 = vadd.f32 %v293_v36, %v3381_v9 }
 0x316   :  { %2935 = vtanh.f32 %v295_v37  ;;  %v296_v39 = vsub.f32 0.0, %v295_v37 }
 0x318   :  { %v297_v40 = vmul.f32 1.442695, %v296_v39 }
 0x31a   :  { %2937 = vpow2.f32 %v297_v40 }
 0x31c   :  { %v2936_v38 = vpop.eup %2935 }
 0x31d   :  { %321 = vrot.lane.b32.xlu2 %v2936_v38, %s3260_s8 }
 0x320   :  { %v2938_v41 = vpop.eup %2937 }
 0x321   :  { %v299_v42 = vadd.f32 1.0, %v2938_v41 }
 0x323   :  { %2939 = vrcp.f32 %v299_v42  ;;  %v311_v48 = vand.u32 2147483648, %v299_v42  ;;  %vm305_vm8 = vweird.f32 %v299_v42  ;;  %v309_v49 = vand.u32 2147483647, %v299_v42 }
 0x325   :  { %v312_v51 = vor.u32 1.1754944e-38, %v311_v48  ;;  %vm310_vm10 = vcmp.eq.f32.partialorder %v309_v49, 8.507059e+37 }
 0x329   :  { %v2940_v43 = vpop.eup %2939 }
 0x32a   :  { %v301_v44 = vmul.f32 %v2940_v43, %v299_v42  ;;  %vm306_vm7 = vweird.f32 %v2940_v43 }
 0x32b   :  { %vm307_vm9 = vmor %vm305_vm8, %vm306_vm7 }
 0x32c   :  { %v302_v45 = vsub.f32 1.0, %v301_v44 }
 0x32e   :  { %v303_v46 = vmul.f32 %v2940_v43, %v302_v45 }
 0x330   :  { %v304_v47 = vadd.f32 %v2940_v43, %v303_v46 }
 0x332   :  { %v308_v50 = vsel %vm307_vm9, %v2940_v43, %v304_v47 }
 0x333   :  { %v313_v53 = vsel %vm310_vm10, %v312_v51, %v308_v50 }
 0x334   :  { %v319_v56 = vmul.f32 %v317_v55, %v313_v53 }
 0x377   :  { %v322_v52 = vpop.permute.xlu2 %321 }
 0x378   :  { %v324_v54 = vmul.f32 %v322_v52, %v313_v53 }
 0x37a   :  { %326 = vrot.lane.b32.xlu2 %v324_v54, %s3249_s13 }
 0x3d4   :  { %v327_v57 = vpop.permute.xlu2 %326 }
 0x3d5   :  { %v329_v58 = vadd.f32 %v327_v57, %v319_v56 }
 0x3d7   :  { %2941 = vtanh.f32 %v329_v58  ;;  %v387_v22 = vrot.slane %v329_v58, 6  ;;  %v163_v58 = vld [vmem:[#allocation3 + $0x8] sm:$0xff] }
 0x3d8   :  { %2227 = vmatmul.msk.f32.gmra.mxu0 %vm170_vm1, %v163_v58 }
 0x3dd   :  { %v2942_v59 = vpop.eup %2941 }
 0x3de   :  { %332 = vrot.lane.b32.xlu0 %v2942_v59, %s3261_s11 }
 0x450   :  { %v333_v60 = vpop.permute.xlu0 %332 }
 0x451   :  { %v335_v61 = vmul.f32 %v333_v60, %v313_v53 }
 0x453   :  { %v337_v62 = vrot.slane %v335_v61, 2 }
 0x455   :  { %338 = vrot.lane.b32.xlu1 %v337_v62, %s3262_s22  ;;  %v201_v60 = vpop.f32.mrf.mxu0 }
 0x456   :  { %v3409_v61 = vadd.f32 %v3378_v6, %v201_v60 }
 0x4c7   :  { %v339_v63 = vpop.permute.xlu1 %338 }
 0x4c8   :  { %2229 = vmatmul.msk.f32.vlgmr.msra.gmra.mxu3 %vm205_vm6, %v339_v63 }
 0x54b   :  { %v359_v0 = vpop.f32.mrf.mxu3 }
 0x54c   :  { %v363_v1 = vrot.slane %v359_v0, 4 }
 0x54e   :  { %v365_v2 = vadd.f32 %v363_v1, %v3381_v9 }
 0x550   :  { %2943 = vtanh.f32 %v365_v2  ;;  %v366_v4 = vsub.f32 0.0, %v365_v2 }
 0x552   :  { %v367_v5 = vmul.f32 1.442695, %v366_v4 }
 0x554   :  { %2945 = vpow2.f32 %v367_v5 }
 0x556   :  { %v2944_v3 = vpop.eup %2943 }
 0x557   :  { %391 = vrot.lane.b32.xlu2 %v2944_v3, %s3260_s8 }
 0x55a   :  { %v2946_v7 = vpop.eup %2945 }
 0x55b   :  { %v369_v8 = vadd.f32 1.0, %v2946_v7 }
 0x55d   :  { %2947 = vrcp.f32 %v369_v8  ;;  %v381_v15 = vand.u32 2147483648, %v369_v8  ;;  %vm375_vm12 = vweird.f32 %v369_v8  ;;  %v379_v16 = vand.u32 2147483647, %v369_v8 }
 0x55f   :  { %v382_v18 = vor.u32 1.1754944e-38, %v381_v15  ;;  %vm380_vm14 = vcmp.eq.f32.partialorder %v379_v16, 8.507059e+37 }
 0x563   :  { %v2948_v10 = vpop.eup %2947 }
 0x564   :  { %v371_v11 = vmul.f32 %v2948_v10, %v369_v8  ;;  %vm376_vm11 = vweird.f32 %v2948_v10 }
 0x565   :  { %vm377_vm13 = vmor %vm375_vm12, %vm376_vm11 }
 0x566   :  { %v372_v12 = vsub.f32 1.0, %v371_v11 }
 0x568   :  { %v373_v13 = vmul.f32 %v2948_v10, %v372_v12 }
 0x56a   :  { %v374_v14 = vadd.f32 %v2948_v10, %v373_v13 }
 0x56c   :  { %v378_v17 = vsel %vm377_vm13, %v2948_v10, %v374_v14 }
 0x56d   :  { %v383_v20 = vsel %vm380_vm14, %v382_v18, %v378_v17 }
 0x56e   :  { %v389_v23 = vmul.f32 %v387_v22, %v383_v20 }
 0x5b1   :  { %v392_v19 = vpop.permute.xlu2 %391 }
 0x5b2   :  { %v394_v21 = vmul.f32 %v392_v19, %v383_v20 }
 0x5b4   :  { %396 = vrot.lane.b32.xlu0 %v394_v21, %s3249_s13 }
 0x626   :  { %v397_v24 = vpop.permute.xlu0 %396 }
 0x627   :  { %v399_v25 = vadd.f32 %v397_v24, %v389_v23 }
 0x629   :  { %2949 = vtanh.f32 %v399_v25  ;;  %v457_v50 = vrot.slane %v399_v25, 6 }
 0x62f   :  { %v2950_v26 = vpop.eup %2949 }
 0x630   :  { %402 = vrot.lane.b32.xlu1 %v2950_v26, %s3261_s11 }
 0x6a2   :  { %v403_v27 = vpop.permute.xlu1 %402 }
 0x6a3   :  { %v405_v28 = vmul.f32 %v403_v27, %v383_v20 }
 0x6a5   :  { %v407_v29 = vrot.slane %v405_v28, 4 }
 0x6a7   :  { %408 = vrot.lane.b32.xlu2 %v407_v29, %s3262_s22 }
 0x701   :  { %v409_v30 = vpop.permute.xlu2 %408 }
 0x702   :  { %2230 = vmatmul.msk.f32.vlgmr.msrb.gmra.mxu1 %vm205_vm6, %v409_v30 }
 0x77f   :  { %v429_v31 = vpop.f32.mrf.mxu1 }
 0x780   :  { %v433_v32 = vrot.slane %v429_v31, 2 }
 0x782   :  { %v435_v33 = vadd.f32 %v433_v32, %v3381_v9 }
 0x784   :  { %2951 = vtanh.f32 %v435_v33  ;;  %v436_v35 = vsub.f32 0.0, %v435_v33 }
 0x786   :  { %v437_v36 = vmul.f32 1.442695, %v436_v35 }
 0x788   :  { %2953 = vpow2.f32 %v437_v36 }
 0x78a   :  { %v2952_v34 = vpop.eup %2951 }
 0x78b   :  { %461 = vrot.lane.b32.xlu0 %v2952_v34, %s3260_s8 }
 0x78e   :  { %v2954_v37 = vpop.eup %2953 }
 0x78f   :  { %v439_v38 = vadd.f32 1.0, %v2954_v37 }
 0x791   :  { %2955 = vrcp.f32 %v439_v38  ;;  %v451_v44 = vand.u32 2147483648, %v439_v38  ;;  %vm445_vm2 = vweird.f32 %v439_v38  ;;  %v449_v45 = vand.u32 2147483647, %v439_v38 }
 0x793   :  { %v452_v46 = vor.u32 1.1754944e-38, %v451_v44  ;;  %vm450_vm4 = vcmp.eq.f32.partialorder %v449_v45, 8.507059e+37 }
 0x797   :  { %v2956_v39 = vpop.eup %2955 }
 0x798   :  { %v441_v40 = vmul.f32 %v2956_v39, %v439_v38  ;;  %vm446_vm15 = vweird.f32 %v2956_v39 }
 0x799   :  { %vm447_vm3 = vmor %vm445_vm2, %vm446_vm15 }
 0x79a   :  { %v442_v41 = vsub.f32 1.0, %v441_v40 }
 0x79c   :  { %v443_v42 = vmul.f32 %v2956_v39, %v442_v41 }
 0x79e   :  { %v444_v43 = vadd.f32 %v2956_v39, %v443_v42 }
 0x7a0   :  { %v448_v9 = vsel %vm447_vm3, %v2956_v39, %v444_v43 }
 0x7a1   :  { %v453_v48 = vsel %vm450_vm4, %v452_v46, %v448_v9 }
 0x7a2   :  { %v459_v51 = vmul.f32 %v457_v50, %v453_v48 }
 0x7fd   :  { %v462_v47 = vpop.permute.xlu0 %461 }
 0x7fe   :  { %v464_v49 = vmul.f32 %v462_v47, %v453_v48 }
 0x800   :  { %466 = vrot.lane.b32.xlu1 %v464_v49, %s3249_s13 }
 0x872   :  { %v467_v52 = vpop.permute.xlu1 %466 }
 0x873   :  { %v469_v53 = vadd.f32 %v467_v52, %v459_v51 }
 0x875   :  { %2957 = vtanh.f32 %v469_v53  ;;  %v524_v18 = vrot.slane %v469_v53, 6 }
 0x87b   :  { %v2958_v54 = vpop.eup %2957 }
 0x87c   :  { %472 = vrot.lane.b32.xlu2 %v2958_v54, %s3261_s11 }
 0x8d6   :  { %v473_v55 = vpop.permute.xlu2 %472 }
 0x8d7   :  { %v475_v56 = vmul.f32 %v473_v55, %v453_v48 }
 0x8d9   :  { %v477_v57 = vrot.slane %v475_v56, 6 }
 0x8db   :  { %478 = vrot.lane.b32.xlu0 %v477_v57, %s3262_s22 }
 0x94d   :  { %v479_v59 = vpop.permute.xlu0 %478 }
 0x94e   :  { %2231 = vmatmul.msk.f32.vlgmr.msrb.gmra.mxu2 %vm205_vm6, %v479_v59 }
 0x9d1   :  { %v499_v62 = vpop.f32.mrf.mxu2 }
 0x9d2   :  { %v502_v63 = vadd.f32 %v499_v62, %v3409_v61 }
 0x9d4   :  { %2959 = vtanh.f32 %v502_v63  ;;  %v503_v1 = vsub.f32 0.0, %v502_v63 }
 0x9d6   :  { %v504_v2 = vmul.f32 1.442695, %v503_v1 }
 0x9d8   :  { %2961 = vpow2.f32 %v504_v2 }
 0x9da   :  { %v2960_v0 = vpop.eup %2959 }
 0x9db   :  { %528 = vrot.lane.b32.xlu1 %v2960_v0, %s3260_s8 }
 0x9de   :  { %v2962_v3 = vpop.eup %2961 }
 0x9df   :  { %v506_v4 = vadd.f32 1.0, %v2962_v3 }
 0x9e1   :  { %2963 = vrcp.f32 %v506_v4  ;;  %v518_v6 = vand.u32 2147483648, %v506_v4  ;;  %vm512_vm5 = vweird.f32 %v506_v4  ;;  %v516_v12 = vand.u32 2147483647, %v506_v4 }
 0x9e3   :  { %v519_v14 = vor.u32 1.1754944e-38, %v518_v6  ;;  %vm517_vm8 = vcmp.eq.f32.partialorder %v516_v12, 8.507059e+37 }
 0x9e7   :  { %v2964_v5 = vpop.eup %2963 }
 0x9e8   :  { %v508_v7 = vmul.f32 %v2964_v5, %v506_v4  ;;  %vm513_vm1 = vweird.f32 %v2964_v5 }
 0x9e9   :  { %vm514_vm7 = vmor %vm512_vm5, %vm513_vm1 }
 0x9ea   :  { %v509_v8 = vsub.f32 1.0, %v508_v7 }
 0x9ec   :  { %v510_v10 = vmul.f32 %v2964_v5, %v509_v8 }
 0x9ee   :  { %v511_v11 = vadd.f32 %v2964_v5, %v510_v10 }
 0x9f0   :  { %v515_v13 = vsel %vm514_vm7, %v2964_v5, %v511_v11  ;;  %vm772_vm7 = vcmask 1043456  }
 0x9f1   :  { %v520_v16 = vsel %vm517_vm8, %v519_v14, %v515_v13  ;;  %vm1933_vm8 = vcmask 1024  }
 0x9f2   :  { %v526_v19 = vmul.f32 %v524_v18, %v520_v16 }
 0xa4d   :  { %v529_v15 = vpop.permute.xlu1 %528 }
 0xa4e   :  { %v531_v17 = vmul.f32 %v529_v15, %v520_v16 }
 0xa50   :  { %533 = vrot.lane.b32.xlu2 %v531_v17, %s3249_s13 }
 0xaaa   :  { %v534_v20 = vpop.permute.xlu2 %533 }
 0xaab   :  { %v536_v21 = vadd.f32 %v534_v20, %v526_v19 }
 0xaad   :  { %2965 = vtanh.f32 %v536_v21  ;;  %v593_v9 = vrot.slane %v536_v21, 6 }
 0xab3   :  { %v2966_v22 = vpop.eup %2965 }
 0xab4   :  { %539 = vrot.lane.b32.xlu0 %v2966_v22, %s3261_s11 }
 0xb26   :  { %v540_v23 = vpop.permute.xlu0 %539 }
 0xb27   :  { %v542_v24 = vmul.f32 %v540_v23, %v520_v16 }
 0xb29   :  { %544 = vrot.lane.b32.xlu1 %v542_v24, %s3262_s22 }
 0xb9b   :  { %v545_v25 = vpop.permute.xlu1 %544 }
 0xb9c   :  { %2232 = vmatmul.msk.f32.vlgmr.msrb.gmra.mxu3 %vm205_vm6, %v545_v25 }
 0xc1f   :  { %v565_v26 = vpop.f32.mrf.mxu3 }
 0xc20   :  { %v569_v27 = vrot.slane %v565_v26, 6 }
 0xc22   :  { %v571_v28 = vadd.f32 %v569_v27, %v3409_v61 }
 0xc24   :  { %2967 = vtanh.f32 %v571_v28  ;;  %v572_v30 = vsub.f32 0.0, %v571_v28 }
 0xc26   :  { %v573_v31 = vmul.f32 1.442695, %v572_v30 }
 0xc28   :  { %2969 = vpow2.f32 %v573_v31 }
 0xc2a   :  { %v2968_v29 = vpop.eup %2967 }
 0xc2b   :  { %597 = vrot.lane.b32.xlu2 %v2968_v29, %s3260_s8 }
 0xc2e   :  { %v2970_v32 = vpop.eup %2969 }
 0xc2f   :  { %v575_v33 = vadd.f32 1.0, %v2970_v32 }
 0xc31   :  { %2971 = vrcp.f32 %v575_v33  ;;  %v587_v39 = vand.u32 2147483648, %v575_v33  ;;  %vm581_vm10 = vweird.f32 %v575_v33  ;;  %v585_v40 = vand.u32 2147483647, %v575_v33 }
 0xc33   :  { %v588_v42 = vor.u32 1.1754944e-38, %v587_v39  ;;  %vm586_vm12 = vcmp.eq.f32.partialorder %v585_v40, 8.507059e+37 }
 0xc37   :  { %v2972_v34 = vpop.eup %2971 }
 0xc38   :  { %v577_v35 = vmul.f32 %v2972_v34, %v575_v33  ;;  %vm582_vm9 = vweird.f32 %v2972_v34 }
 0xc39   :  { %vm583_vm11 = vmor %vm581_vm10, %vm582_vm9  ;;  %vm1974_vm9 = vcmask 9224   ;;  %vm2012_vm10 = vcmask 17424  }
 0xc3a   :  { %v578_v36 = vsub.f32 1.0, %v577_v35 }
 0xc3c   :  { %v579_v37 = vmul.f32 %v2972_v34, %v578_v36 }
 0xc3e   :  { %v580_v38 = vadd.f32 %v2972_v34, %v579_v37 }
 0xc40   :  { %v584_v41 = vsel %vm583_vm11, %v2972_v34, %v580_v38  ;;  %vm2050_vm11 = vcmask 25624  }
 0xc41   :  { %v589_v44 = vsel %vm586_vm12, %v588_v42, %v584_v41  ;;  %vm2088_vm12 = vcmask 33824  }
 0xc42   :  { %v595_v46 = vmul.f32 %v593_v9, %v589_v44 }
 0xc85   :  { %v598_v43 = vpop.permute.xlu2 %597 }
 0xc86   :  { %v600_v45 = vmul.f32 %v598_v43, %v589_v44 }
 0xc88   :  { %602 = vrot.lane.b32.xlu0 %v600_v45, %s3249_s13  ;;  %v753_v45 = vld [vmem:[#allocation11] sm:$0xff] }
 0xc89   :  { %v765_v9 = vunpack.c.l.b16 %v753_v45 }
 0xcfa   :  { %v603_v47 = vpop.permute.xlu0 %602 }
 0xcfb   :  { %v605_v48 = vadd.f32 %v603_v47, %v595_v46  ;;  %v766_v46 = vunpack.c.h.b16 %v753_v45  ;;  %v767_v47 = vpack.c.b16 %v765_v9, %v765_v9  ;;  %v2775_v9 = vld [vmem:[#allocation14 + $0x34] sm:$0xf0] }
 0xcfd   :  { %2973 = vtanh.f32 %v605_v48  ;;  %v663_v12 = vrot.slane %v605_v48, 6  ;;  %v768_v48 = vpack.c.b16 %v766_v46, %v766_v46  ;;  %v2774_v46 = vld [vmem:[#allocation14 + $0x34] sm:$0xf] }
 0xd03   :  { %v2974_v49 = vpop.eup %2973 }
 0xd04   :  { %608 = vrot.lane.b32.xlu1 %v2974_v49, %s3261_s11  ;;  %v774_v49 = vsel %vm772_vm7, %v767_v47, 0  ;;  %v2265_v47 = vld [vmem:[#allocation14 + $0x38] sm:$0xf0] }
 0xd05   :  { %786 = vmatpush.bf16.msra.mxu3 %v774_v49  ;;  %v2319_v49 = vld [vmem:[#allocation14 + $0xa0] sm:$0xf] }
 0xd76   :  { %v609_v50 = vpop.permute.xlu1 %608 }
 0xd77   :  { %v611_v51 = vmul.f32 %v609_v50, %v589_v44  ;;  %v777_v50 = vsel %vm772_vm7, %v768_v48, 0 }
 0xd78   :  { %799 = vmatpush.bf16.msrb.mxu0 %v777_v50  ;;  %v2789_v50 = vld [vmem:[#allocation14 + $0xa4] sm:$0xf0] }
 0xd79   :  { %v613_v52 = vrot.slane %v611_v51, 2 }
 0xd7b   :  { %614 = vrot.lane.b32.xlu2 %v613_v52, %s3262_s22 }
 0xdd5   :  { %v615_v53 = vpop.permute.xlu2 %614 }
 0xdd6   :  { %2233 = vmatmul.msk.f32.vlgmr.msra.gmra.mxu1 %vm205_vm6, %v615_v53 }
 0xe53   :  { %v635_v54 = vpop.f32.mrf.mxu1 }
 0xe54   :  { %v639_v55 = vrot.slane %v635_v54, 4 }
 0xe56   :  { %v641_v56 = vadd.f32 %v639_v55, %v3409_v61  ;;  %v2359_v55 = vld [vmem:[#allocation14 + $0xf0] sm:$0xf] }
 0xe58   :  { %2975 = vtanh.f32 %v641_v56  ;;  %v642_v58 = vsub.f32 0.0, %v641_v56  ;;  %v2799_v56 = vld [vmem:[#allocation14 + $0xf4] sm:$0xf0] }
 0xe5a   :  { %v643_v59 = vmul.f32 1.442695, %v642_v58  ;;  %v2360_v58 = vor.u32 %v2799_v56, %v2359_v55  ;;  %v2320_v55 = vor.u32 %v2789_v50, %v2319_v49  ;;  %v2830_v49 = vld [vmem:[#allocation14 + $0x1f4] sm:$0xf] }
 0xe5c   :  { %2977 = vpow2.f32 %v643_v59  ;;  %v2361_v59 = vld [vmem:[#allocation14 + $0xf8] sm:$0xf0]  ;;  %1018 = vmatpush.bf16.msrb.mxu2 %v2360_v58  ;;  %v2787_v58 = vld [vmem:[#allocation14 + $0x94] sm:$0xf0] }
 0xe5e   :  { %v2976_v57 = vpop.eup %2975 }
 0xe5f   :  { %667 = vrot.lane.b32.xlu0 %v2976_v57, %s3260_s8  ;;  %v2798_v57 = vld [vmem:[#allocation14 + $0xf4] sm:$0xf] }
 0xe62   :  { %v2978_v60 = vpop.eup %2977 }
 0xe63   :  { %v645_v62 = vadd.f32 1.0, %v2978_v60  ;;  %v2351_v60 = vld [vmem:[#allocation14 + $0xe0] sm:$0xf] }
 0xe65   :  { %2979 = vrcp.f32 %v645_v62  ;;  %v657_v4 = vand.u32 2147483648, %v645_v62  ;;  %vm651_vm14 = vweird.f32 %v645_v62  ;;  %v655_v5 = vand.u32 2147483647, %v645_v62 }
 0xe67   :  { %v658_v8 = vor.u32 1.1754944e-38, %v657_v4  ;;  %vm656_vm2 = vcmp.eq.f32.partialorder %v655_v5, 8.507059e+37  ;;  %v2783_v4 = vld [vmem:[#allocation14 + $0x74] sm:$0xf0]  ;;  %v2782_v5 = vld [vmem:[#allocation14 + $0x74] sm:$0xf] }
 0xe6b   :  { %v2980_v63 = vpop.eup %2979 }
 0xe6c   :  { %v647_v0 = vmul.f32 %v2980_v63, %v645_v62  ;;  %vm652_vm13 = vweird.f32 %v2980_v63  ;;  %v2797_v62 = vld [vmem:[#allocation14 + $0xe4] sm:$0xf0] }
 0xe6d   :  { %vm653_vm15 = vmor %vm651_vm14, %vm652_vm13  ;;  %vm2126_vm13 = vcmask 42024   ;;  %vm2202_vm14 = vcmask 58424  }
 0xe6e   :  { %v648_v1 = vsub.f32 1.0, %v647_v0  ;;  %v2796_v0 = vld [vmem:[#allocation14 + $0xe4] sm:$0xf] }
 0xe70   :  { %v649_v2 = vmul.f32 %v2980_v63, %v648_v1  ;;  %v2353_v1 = vld [vmem:[#allocation14 + $0xe8] sm:$0xf0] }
 0xe72   :  { %v650_v3 = vadd.f32 %v2980_v63, %v649_v2  ;;  %v2295_v2 = vld [vmem:[#allocation14 + $0x70] sm:$0xf] }
 0xe74   :  { %v654_v7 = vsel %vm653_vm15, %v2980_v63, %v650_v3  ;;  %v2364_v63 = vor.u32 %v2798_v57, %v2361_v59  ;;  %v2352_v3 = vor.u32 %v2797_v62, %v2351_v60  ;;  %v2311_v57 = vld [vmem:[#allocation14 + $0x90] sm:$0xf]  ;;  %v2786_v59 = vld [vmem:[#allocation14 + $0x94] sm:$0xf]  ;;  %v2313_v60 = vld [vmem:[#allocation14 + $0x98] sm:$0xf0] }
 0xe75   :  { %v659_v11 = vsel %vm656_vm2, %v658_v8, %v654_v7  ;;  %v2297_v7 = vld [vmem:[#allocation14 + $0x78] sm:$0xf0]  ;;  %v2356_v8 = vor.u32 %v2796_v0, %v2353_v1  ;;  %v2312_v62 = vor.u32 %v2787_v58, %v2311_v57  ;;  %v2255_v1 = vld [vmem:[#allocation14 + $0x20] sm:$0xf] }
 0xe76   :  { %v665_v13 = vmul.f32 %v663_v12, %v659_v11  ;;  %1044 = vmatpush.bf16.msra.mxu0 %v2364_v63  ;;  %v2795_v12 = vld [vmem:[#allocation14 + $0xd4] sm:$0xf0]  ;;  %1019 = vmatpush.bf16.msrb.mxu2 %v2352_v3  ;;  %v2316_v63 = vor.u32 %v2786_v59, %v2313_v60  ;;  %v2772_v3 = vld [vmem:[#allocation14 + $0x24] sm:$0xf]  ;;  %v2410_v57 = vld [vmem:[#allocation14 + $0x158] sm:$0xf0] }
 0xe77   :  { %v2480_v59 = vld [vmem:[#allocation14 + $0x1e0] sm:$0xf]  ;;  %v2829_v60 = vld [vmem:[#allocation14 + $0x1e4] sm:$0xf0] }
 0xe7a   :  { %1045 = vmatpush.bf16.msra.mxu0 %v2356_v8  ;;  %v2303_v8 = vld [vmem:[#allocation14 + $0x80] sm:$0xf] }
 0xed1   :  { %v668_v10 = vpop.permute.xlu0 %667 }
 0xed2   :  { %v670_v6 = vmul.f32 %v668_v10, %v659_v11  ;;  %v2296_v10 = vor.u32 %v2783_v4, %v2295_v2  ;;  %v2773_v2 = vld [vmem:[#allocation14 + $0x24] sm:$0xf0] }
 0xed3   :  { %v2256_v4 = vor.u32 %v2773_v2, %v2255_v1  ;;  %v2400_v2 = vld [vmem:[#allocation14 + $0x140] sm:$0xf] }
 0xed4   :  { %672 = vrot.lane.b32.xlu1 %v670_v6, %s3249_s13  ;;  %v2343_v6 = vld [vmem:[#allocation14 + $0xd0] sm:$0xf]  ;;  %1005 = vmatpush.bf16.msrb.mxu1 %v2296_v10  ;;  %v2785_v10 = vld [vmem:[#allocation14 + $0x84] sm:$0xf0] }
 0xf46   :  { %v673_v14 = vpop.permute.xlu1 %672 }
 0xf47   :  { %v675_v15 = vadd.f32 %v673_v14, %v665_v13  ;;  %v2794_v13 = vld [vmem:[#allocation14 + $0xd4] sm:$0xf]  ;;  %v2345_v14 = vld [vmem:[#allocation14 + $0xd8] sm:$0xf0] }
 0xf49   :  { %2981 = vtanh.f32 %v675_v15  ;;  %v733_v40 = vrot.slane %v675_v15, 6  ;;  %v2287_v15 = vld [vmem:[#allocation14 + $0x60] sm:$0xf] }
 0xf4f   :  { %v2982_v16 = vpop.eup %2981 }
 0xf50   :  { %678 = vrot.lane.b32.xlu2 %v2982_v16, %s3261_s11  ;;  %v2781_v16 = vld [vmem:[#allocation14 + $0x64] sm:$0xf0] }
 0xfaa   :  { %v679_v17 = vpop.permute.xlu2 %678 }
 0xfab   :  { %v681_v18 = vmul.f32 %v679_v17, %v659_v11  ;;  %v2300_v11 = vor.u32 %v2782_v5, %v2297_v7  ;;  %v2288_v17 = vor.u32 %v2781_v16, %v2287_v15  ;;  %v2257_v5 = vld [vmem:[#allocation14 + $0x28] sm:$0xf0]  ;;  %v2771_v15 = vld [vmem:[#allocation14 + $0x14] sm:$0xf0]  ;;  %v2770_v16 = vld [vmem:[#allocation14 + $0x14] sm:$0xf] }
 0xfac   :  { %v2260_v7 = vor.u32 %v2772_v3, %v2257_v5  ;;  %v2809_v3 = vld [vmem:[#allocation14 + $0x144] sm:$0xf0] }
 0xfad   :  { %v683_v19 = vrot.slane %v681_v18, 4  ;;  %1031 = vmatpush.bf16.msrb.mxu3 %v2300_v11  ;;  %v2780_v18 = vld [vmem:[#allocation14 + $0x64] sm:$0xf]  ;;  %1006 = vmatpush.bf16.msrb.mxu1 %v2288_v17  ;;  %v2401_v5 = vor.u32 %v2809_v3, %v2400_v2 }
 0xfae   :  { %v2784_v11 = vld [vmem:[#allocation14 + $0x84] sm:$0xf] }
 0xfaf   :  { %684 = vrot.lane.b32.xlu0 %v683_v19, %s3262_s22  ;;  %v2289_v19 = vld [vmem:[#allocation14 + $0x68] sm:$0xf0]  ;;  %v2816_v2 = vld [vmem:[#allocation14 + $0x184] sm:$0xf] }
0x1021   :  { %v685_v20 = vpop.permute.xlu0 %684 }
0x1022   :  { %2234 = vmatmul.msk.f32.vlgmr.msra.gmra.mxu2 %vm205_vm6, %v685_v20  ;;  %v2344_v20 = vor.u32 %v2795_v12, %v2343_v6  ;;  %v2304_v6 = vor.u32 %v2785_v10, %v2303_v8  ;;  %v2305_v12 = vld [vmem:[#allocation14 + $0x88] sm:$0xf0]  ;;  %v2472_v10 = vld [vmem:[#allocation14 + $0x1d0] sm:$0xf] }
0x1024   :  { %1020 = vmatpush.bf16.msrb.mxu2 %v2344_v20  ;;  %v2239_v20 = vld [vmem:[#allocation14] sm:$0xf] }
0x10a5   :  { %v705_v21 = vpop.f32.mrf.mxu2 }
0x10a6   :  { %v709_v22 = vrot.slane %v705_v21, 2  ;;  %v2292_v21 = vor.u32 %v2780_v18, %v2289_v19  ;;  %v2249_v18 = vld [vmem:[#allocation14 + $0x18] sm:$0xf0] }
0x10a7   :  { %v2252_v19 = vor.u32 %v2770_v16, %v2249_v18  ;;  %v2807_v16 = vld [vmem:[#allocation14 + $0x134] sm:$0xf0] }
0x10a8   :  { %v711_v23 = vadd.f32 %v709_v22, %v3409_v61  ;;  %v2335_v22 = vld [vmem:[#allocation14 + $0xc0] sm:$0xf]  ;;  %1032 = vmatpush.bf16.msrb.mxu3 %v2292_v21  ;;  %v2769_v21 = vld [vmem:[#allocation14 + $0x4] sm:$0xf0] }
0x10aa   :  { %2983 = vtanh.f32 %v711_v23  ;;  %v712_v25 = vsub.f32 0.0, %v711_v23  ;;  %v2793_v23 = vld [vmem:[#allocation14 + $0xc4] sm:$0xf0] }
0x10ac   :  { %v713_v26 = vmul.f32 1.442695, %v712_v25  ;;  %v2279_v25 = vld [vmem:[#allocation14 + $0x50] sm:$0xf] }
0x10ae   :  { %2985 = vpow2.f32 %v713_v26  ;;  %v2779_v26 = vld [vmem:[#allocation14 + $0x54] sm:$0xf0] }
0x10b0   :  { %v2984_v24 = vpop.eup %2983 }
0x10b1   :  { %737 = vrot.lane.b32.xlu1 %v2984_v24, %s3260_s8  ;;  %v2348_v24 = vor.u32 %v2794_v13, %v2345_v14  ;;  %v2308_v13 = vor.u32 %v2784_v11, %v2305_v12  ;;  %v2247_v14 = vld [vmem:[#allocation14 + $0x10] sm:$0xf]  ;;  %v2827_v11 = vld [vmem:[#allocation14 + $0x1d4] sm:$0xf0] }
0x10b2   :  { %v2248_v17 = vor.u32 %v2771_v15, %v2247_v14  ;;  %v2473_v12 = vor.u32 %v2827_v11, %v2472_v10  ;;  %v2392_v15 = vld [vmem:[#allocation14 + $0x130] sm:$0xf] }
0x10b3   :  { %1046 = vmatpush.bf16.msra.mxu0 %v2348_v24  ;;  %v2241_v24 = vld [vmem:[#allocation14 + $0x8] sm:$0xf0]  ;;  %v2393_v18 = vor.u32 %v2807_v16, %v2392_v15 }
0x10b4   :  { %v2986_v27 = vpop.eup %2985 }
0x10b5   :  { %v715_v28 = vadd.f32 1.0, %v2986_v27  ;;  %v2778_v27 = vld [vmem:[#allocation14 + $0x54] sm:$0xf] }
0x10b7   :  { %2987 = vrcp.f32 %v715_v28  ;;  %v727_v34 = vand.u32 2147483648, %v715_v28  ;;  %vm721_vm4 = vweird.f32 %v715_v28  ;;  %v725_v35 = vand.u32 2147483647, %v715_v28 }
0x10b9   :  { %v728_v36 = vor.u32 1.1754944e-38, %v727_v34  ;;  %vm726_vm5 = vcmp.eq.f32.partialorder %v725_v35, 8.507059e+37  ;;  %v2336_v34 = vor.u32 %v2793_v23, %v2335_v22  ;;  %v2777_v35 = vld [vmem:[#allocation14 + $0x44] sm:$0xf0]  ;;  %v2240_v22 = vor.u32 %v2769_v21, %v2239_v20  ;;  %v2768_v23 = vld [vmem:[#allocation14 + $0x4] sm:$0xf] }
0x10ba   :  { %v2464_v21 = vld [vmem:[#allocation14 + $0x1c0] sm:$0xf] }
0x10bb   :  { %1021 = vmatpush.bf16.msrb.mxu2 %v2336_v34 }
0x10bd   :  { %v2988_v29 = vpop.eup %2987 }
0x10be   :  { %v717_v30 = vmul.f32 %v2988_v29, %v715_v28  ;;  %vm722_vm3 = vweird.f32 %v2988_v29  ;;  %v2792_v28 = vld [vmem:[#allocation14 + $0xc4] sm:$0xf] }
0x10bf   :  { %vm723_vm1 = vmor %vm721_vm4, %vm722_vm3 }
0x10c0   :  { %v718_v31 = vsub.f32 1.0, %v717_v30  ;;  %v2281_v30 = vld [vmem:[#allocation14 + $0x58] sm:$0xf0] }
0x10c2   :  { %v719_v32 = vmul.f32 %v2988_v29, %v718_v31  ;;  %v2280_v31 = vor.u32 %v2779_v26, %v2279_v25  ;;  %v2244_v25 = vor.u32 %v2768_v23, %v2241_v24  ;;  %v754_v26 = vld [vmem:[#allocation12] sm:$0x3]  ;;  %v2824_v23 = vld [vmem:[#allocation14 + $0x1c4] sm:$0xf] }
0x10c4   :  { %v720_v33 = vadd.f32 %v2988_v29, %v719_v32  ;;  %v2284_v32 = vor.u32 %v2778_v27, %v2281_v30  ;;  %1007 = vmatpush.bf16.msrb.mxu1 %v2280_v31  ;;  %v757_v27 = vperm.slane %v754_v26, 1  ;;  %v756_v31 = vperm.slane %v754_v26, 0 }
0x10c6   :  { %v724_v61 = vsel %vm723_vm1, %v2988_v29, %v720_v33  ;;  %v2337_v29 = vld [vmem:[#allocation14 + $0xc8] sm:$0xf0]  ;;  %v2271_v33 = vld [vmem:[#allocation14 + $0x40] sm:$0xf]  ;;  %1033 = vmatpush.bf16.msrb.mxu3 %v2284_v32 }
0x10c7   :  { %v729_v38 = vsel %vm726_vm5, %v728_v36, %v724_v61  ;;  %v2776_v61 = vld [vmem:[#allocation14 + $0x44] sm:$0xf]  ;;  %v2273_v36 = vld [vmem:[#allocation14 + $0x48] sm:$0xf0] }
0x10c8   :  { %v735_v41 = vmul.f32 %v733_v40, %v729_v38  ;;  %v2790_v40 = vld [vmem:[#allocation14 + $0xb4] sm:$0xf] }
0x1123   :  { %v738_v37 = vpop.permute.xlu1 %737 }
0x1124   :  { %v740_v39 = vmul.f32 %v738_v37, %v729_v38  ;;  %v2340_v37 = vor.u32 %v2792_v28, %v2337_v29 }
0x1126   :  { %742 = vrot.lane.b32.xlu2 %v740_v39, %s3249_s13  ;;  %v2791_v39 = vld [vmem:[#allocation14 + $0xb4] sm:$0xf0]  ;;  %1047 = vmatpush.bf16.msra.mxu0 %v2340_v37 }
0x1127   :  { %v2815_v37 = vld [vmem:[#allocation14 + $0x174] sm:$0xf0] }
0x1180   :  { %v743_v42 = vpop.permute.xlu2 %742 }
0x1181   :  { %v745_v43 = vadd.f32 %v743_v42, %v735_v41  ;;  %v2329_v41 = vld [vmem:[#allocation14 + $0xb8] sm:$0xf0]  ;;  %v2272_v42 = vor.u32 %v2777_v35, %v2271_v33 }
0x1182   :  { %v2332_v48 = vor.u32 %v2790_v40, %v2329_v41  ;;  %v2426_v40 = vld [vmem:[#allocation14 + $0x178] sm:$0xf0] }
0x1183   :  { %2989 = vtanh.f32 %v745_v43  ;;  %v2276_v43 = vor.u32 %v2776_v61, %v2273_v36  ;;  %1008 = vmatpush.bf16.msrb.mxu1 %v2272_v42  ;;  %v2424_v36 = vld [vmem:[#allocation14 + $0x170] sm:$0xf]  ;;  %v2416_v42 = vld [vmem:[#allocation14 + $0x160] sm:$0xf] }
0x1184   :  { %1048 = vmatpush.bf16.msra.mxu0 %v2332_v48  ;;  %v2831_v48 = vld [vmem:[#allocation14 + $0x1f4] sm:$0xf0] }
0x1185   :  { %1034 = vmatpush.bf16.msrb.mxu3 %v2276_v43  ;;  %v2813_v43 = vld [vmem:[#allocation14 + $0x164] sm:$0xf0] }
0x1189   :  { %v2990_v44 = vpop.eup %2989 }
0x118a   :  { %748 = vrot.lane.b32.xlu0 %v2990_v44, %s3261_s11  ;;  %v2263_v44 = vld [vmem:[#allocation14 + $0x30] sm:$0xf] }
0x11fc   :  { %v749_v51 = vpop.permute.xlu0 %748 }
0x11fd   :  { %v751_v52 = vmul.f32 %v749_v51, %v729_v38  ;;  %v2327_v38 = vld [vmem:[#allocation14 + $0xb0] sm:$0xf]  ;;  %v2788_v51 = vld [vmem:[#allocation14 + $0xa4] sm:$0xf] }
0x11fe   :  { %v2328_v45 = vor.u32 %v2791_v39, %v2327_v38  ;;  %v2814_v38 = vld [vmem:[#allocation14 + $0x174] sm:$0xf]  ;;  %v2425_v39 = vor.u32 %v2815_v37, %v2424_v36  ;;  %v2458_v36 = vld [vmem:[#allocation14 + $0x1b8] sm:$0xf0]  ;;  %v2376_v37 = vld [vmem:[#allocation14 + $0x110] sm:$0xf] }
0x11ff   :  { %v752_v53 = vpack.c.bf16 %v751_v52, %v751_v52  ;;  %v2321_v52 = vld [vmem:[#allocation14 + $0xa8] sm:$0xf0]  ;;  %v2429_v41 = vor.u32 %v2814_v38, %v2426_v40  ;;  %v2802_v40 = vld [vmem:[#allocation14 + $0x114] sm:$0xf] }
0x1200   :  { %1022 = vmatpush.bf16.msrb.mxu2 %v2328_v45  ;;  %v2324_v56 = vor.u32 %v2788_v51, %v2321_v52  ;;  %v2417_v45 = vor.u32 %v2813_v43, %v2416_v42  ;;  %v2490_v51 = vld [vmem:[#allocation14 + $0x1f8] sm:$0xf0] }
0x1201   :  { %v761_v54 = vrot.slane %v752_v53, 3  ;;  %v2264_v53 = vor.u32 %v2775_v9, %v2263_v44  ;;  %v2812_v44 = vld [vmem:[#allocation14 + $0x164] sm:$0xf]  ;;  %v2418_v9 = vld [vmem:[#allocation14 + $0x168] sm:$0xf0]  ;;  %v2493_v52 = vor.u32 %v2830_v49, %v2490_v51 }
0x1202   :  { %1049 = vmatpush.bf16.msra.mxu0 %v2324_v56  ;;  %v2801_v49 = vld [vmem:[#allocation14 + $0x104] sm:$0xf0]  ;;  %v2800_v51 = vld [vmem:[#allocation14 + $0x104] sm:$0xf] }
0x1203   :  { %762 = vrot.lane.b32.xlu1 %v761_v54, %s3262_s22  ;;  %v2268_v54 = vor.u32 %v2774_v46, %v2265_v47  ;;  %1009 = vmatpush.bf16.msrb.mxu1 %v2264_v53  ;;  %v2421_v46 = vor.u32 %v2812_v44, %v2418_v9  ;;  %v2488_v47 = vld [vmem:[#allocation14 + $0x1f0] sm:$0xf]  ;;  %v2448_v44 = vld [vmem:[#allocation14 + $0x1a0] sm:$0xf]  ;;  %v2820_v9 = vld [vmem:[#allocation14 + $0x1a4] sm:$0xf] }
0x1204   :  { %1023 = vmatpush.bf16.msrb.mxu2 %v2320_v55  ;;  %v2489_v50 = vor.u32 %v2831_v48, %v2488_v47  ;;  %v2408_v53 = vld [vmem:[#allocation14 + $0x150] sm:$0xf]  ;;  %v2810_v55 = vld [vmem:[#allocation14 + $0x154] sm:$0xf]  ;;  %v2450_v47 = vld [vmem:[#allocation14 + $0x1a8] sm:$0xf0] }
0x1205   :  { %1035 = vmatpush.bf16.msrb.mxu3 %v2268_v54  ;;  %v2811_v54 = vld [vmem:[#allocation14 + $0x154] sm:$0xf0]  ;;  %v2413_v58 = vor.u32 %v2810_v55, %v2410_v57  ;;  %v2368_v48 = vld [vmem:[#allocation14 + $0x100] sm:$0xf]  ;;  %v2442_v57 = vld [vmem:[#allocation14 + $0x198] sm:$0xf0] }
0x1206   :  { %1050 = vmatpush.bf16.msra.mxu0 %v2316_v63  ;;  %v2409_v56 = vor.u32 %v2811_v54, %v2408_v53  ;;  %v2481_v63 = vor.u32 %v2829_v60, %v2480_v59  ;;  %v2440_v53 = vld [vmem:[#allocation14 + $0x190] sm:$0xf]  ;;  %v2369_v54 = vor.u32 %v2801_v49, %v2368_v48  ;;  %v2819_v55 = vld [vmem:[#allocation14 + $0x194] sm:$0xf0]  ;;  %v2861_v48 = vld [vmem:[#allocation14 + $0x2e4] sm:$0xf0] }
0x1207   :  { %1010 = vmatpush.bf16.msrb.mxu1 %v2256_v4  ;;  %v2808_v4 = vld [vmem:[#allocation14 + $0x144] sm:$0xf]  ;;  %v2441_v59 = vor.u32 %v2819_v55, %v2440_v53  ;;  %v2846_v49 = vld [vmem:[#allocation14 + $0x274] sm:$0xf] }
0x1208   :  { %1024 = vmatpush.bf16.msrb.mxu2 %v2312_v62  ;;  %v2828_v62 = vld [vmem:[#allocation14 + $0x1e4] sm:$0xf] }
0x1209   :  { %1036 = vmatpush.bf16.msrb.mxu3 %v2260_v7  ;;  %v2402_v7 = vld [vmem:[#allocation14 + $0x148] sm:$0xf0]  ;;  %v2860_v53 = vld [vmem:[#allocation14 + $0x2e4] sm:$0xf] }
0x120a   :  { %1051 = vmatpush.bf16.msra.mxu0 %v2308_v13  ;;  %v2405_v8 = vor.u32 %v2808_v4, %v2402_v7  ;;  %v2474_v13 = vld [vmem:[#allocation14 + $0x1d8] sm:$0xf0] }
0x120b   :  { %1011 = vmatpush.bf16.msrb.mxu1 %v2248_v17  ;;  %v2806_v17 = vld [vmem:[#allocation14 + $0x134] sm:$0xf] }
0x120c   :  { %1025 = vmatpush.bf16.msrb.mxu2 %v2304_v6  ;;  %v2826_v6 = vld [vmem:[#allocation14 + $0x1d4] sm:$0xf] }
0x120d   :  { %1037 = vmatpush.bf16.msrb.mxu3 %v2252_v19  ;;  %v2477_v14 = vor.u32 %v2826_v6, %v2474_v13  ;;  %v2394_v19 = vld [vmem:[#allocation14 + $0x138] sm:$0xf0] }
0x120e   :  { %v2397_v20 = vor.u32 %v2806_v17, %v2394_v19 }
0x120f   :  { %1012 = vmatpush.bf16.msrb.mxu1 %v2240_v22  ;;  %v2825_v22 = vld [vmem:[#allocation14 + $0x1c4] sm:$0xf0] }
0x1210   :  { %1290 = vmatpush.bf16.msra.mxu2 %v2489_v50  ;;  %v2465_v24 = vor.u32 %v2825_v22, %v2464_v21  ;;  %v2453_v50 = vor.u32 %v2820_v9, %v2450_v47  ;;  %v2847_v9 = vld [vmem:[#allocation14 + $0x274] sm:$0xf0] }
0x1211   :  { %1038 = vmatpush.bf16.msrb.mxu3 %v2244_v25  ;;  %v2466_v25 = vld [vmem:[#allocation14 + $0x1c8] sm:$0xf0] }
0x1212   :  { %v2469_v26 = vor.u32 %v2824_v23, %v2466_v25 }
0x1213   :  { %1277 = vmatpush.bf16.msra.mxu1 %v2425_v39  ;;  %v2803_v39 = vld [vmem:[#allocation14 + $0x114] sm:$0xf0] }
0x1214   :  { %1291 = vmatpush.bf16.msra.mxu2 %v2481_v63  ;;  %v2377_v42 = vor.u32 %v2803_v39, %v2376_v37  ;;  %v839_v63 = vld [vmem:[%s3513_s7] sm:$0x3]  ;;  %v2617_v39 = vld [vmem:[#allocation14 + $0x2f0] sm:$0xf] }
0x1215   :  { %v841_v3 = vperm.slane %v839_v63, 0  ;;  %v842_v13 = vperm.slane %v839_v63, 1  ;;  %v2547_v63 = vld [vmem:[#allocation14 + $0x268] sm:$0xf0] }
0x1217   :  { %1278 = vmatpush.bf16.msra.mxu1 %v2417_v45  ;;  %v2821_v45 = vld [vmem:[#allocation14 + $0x1a4] sm:$0xf0] }
0x1218   :  { %1292 = vmatpush.bf16.msra.mxu2 %v2473_v12 }
0x121b   :  { %1279 = vmatpush.bf16.msra.mxu1 %v2409_v56  ;;  %v2818_v56 = vld [vmem:[#allocation14 + $0x194] sm:$0xf] }
0x121c   :  { %1293 = vmatpush.bf16.msra.mxu2 %v2465_v24  ;;  %v2445_v60 = vor.u32 %v2818_v56, %v2442_v57  ;;  %v2545_v56 = vld [vmem:[#allocation14 + $0x260] sm:$0xf]  ;;  %v2845_v57 = vld [vmem:[#allocation14 + $0x264] sm:$0xf0] }
0x121f   :  { %1280 = vmatpush.bf16.msra.mxu1 %v2401_v5  ;;  %v2434_v5 = vld [vmem:[#allocation14 + $0x188] sm:$0xf0] }
0x1220   :  { %v2437_v7 = vor.u32 %v2816_v2, %v2434_v5  ;;  %v2858_v2 = vld [vmem:[#allocation14 + $0x2d4] sm:$0xf]  ;;  %v2537_v5 = vld [vmem:[#allocation14 + $0x250] sm:$0xf] }
0x1223   :  { %1281 = vmatpush.bf16.msra.mxu1 %v2393_v18 }
0x1275   :  { %v763_v0 = vpop.permute.xlu1 %762 }
0x1276   :  { %2235 = vmatmul.msk.bf16.vlgmr.msra.gmra.mxu3 %vm205_vm6, %v763_v0  ;;  %2236 = vmatmul.msk.bf16.vlgmr.msrb.gmra.mxu0 %vm205_vm6, %v763_v0  ;;  %v2482_v0 = vld [vmem:[#allocation14 + $0x1e8] sm:$0xf0]  ;;  %vm1896_vm6 = vcmask 261120  }
0x1277   :  { %1303 = vmatpush.bf16.msra.mxu3 %v2429_v41  ;;  %1316 = vmatpush.bf16.msrb.mxu0 %v2493_v52  ;;  %v2485_v1 = vor.u32 %v2828_v62, %v2482_v0  ;;  %v2378_v41 = vld [vmem:[#allocation14 + $0x118] sm:$0xf0]  ;;  %v2370_v52 = vld [vmem:[#allocation14 + $0x108] sm:$0xf0]  ;;  %v2432_v0 = vld [vmem:[#allocation14 + $0x180] sm:$0xf] }
0x1278   :  { %v2381_v43 = vor.u32 %v2802_v40, %v2378_v41  ;;  %v2863_v40 = vld [vmem:[#allocation14 + $0x2f4] sm:$0xf0]  ;;  %v2862_v41 = vld [vmem:[#allocation14 + $0x2f4] sm:$0xf] }
0x127b   :  { %1304 = vmatpush.bf16.msra.mxu3 %v2421_v46  ;;  %1317 = vmatpush.bf16.msrb.mxu0 %v2485_v1  ;;  %v2449_v46 = vor.u32 %v2821_v45, %v2448_v44  ;;  %v2817_v1 = vld [vmem:[#allocation14 + $0x184] sm:$0xf0]  ;;  %v2553_v45 = vld [vmem:[#allocation14 + $0x270] sm:$0xf] }
0x127c   :  { %v2433_v4 = vor.u32 %v2817_v1, %v2432_v0  ;;  %v2554_v47 = vor.u32 %v2847_v9, %v2553_v45 }
0x127f   :  { %1305 = vmatpush.bf16.msra.mxu3 %v2413_v58  ;;  %1318 = vmatpush.bf16.msrb.mxu0 %v2477_v14  ;;  %v2373_v58 = vor.u32 %v2800_v51, %v2370_v52 }
0x1283   :  { %1306 = vmatpush.bf16.msra.mxu3 %v2405_v8  ;;  %1319 = vmatpush.bf16.msrb.mxu0 %v2469_v26 }
0x1287   :  { %1307 = vmatpush.bf16.msra.mxu3 %v2397_v20 }
0x12f3   :  { %v801_v28 = vpop.f32.mrf.mxu0 }
0x12f4   :  { %v802_v29 = vadd.f32 %v801_v28, %v757_v27  ;;  %v2384_v27 = vld [vmem:[#allocation14 + $0x120] sm:$0xf]  ;;  %v2805_v28 = vld [vmem:[#allocation14 + $0x124] sm:$0xf0] }
0x12f6   :  { %v806_v30 = vpack.c.bf16 %v802_v29, %v802_v29  ;;  %v2804_v29 = vld [vmem:[#allocation14 + $0x124] sm:$0xf] }
0x12f8   :  { %1026 = vmatmul.bf16.vlgmr.msrb.gmra.mxu2 %v806_v30  ;;  %1052 = vmatmul.bf16.vlgmr.msra.gmra.mxu0 %v806_v30  ;;  %v2385_v30 = vor.u32 %v2805_v28, %v2384_v27 }
0x12f9   :  { %v788_v32 = vpop.f32.mrf.mxu3 }
0x12fa   :  { %v789_v33 = vadd.f32 %v788_v32, %v756_v31  ;;  %v2386_v31 = vld [vmem:[#allocation14 + $0x128] sm:$0xf0]  ;;  %v2456_v32 = vld [vmem:[#allocation14 + $0x1b0] sm:$0xf]  ;;  %1282 = vmatpush.bf16.msra.mxu1 %v2385_v30 }
0x12fb   :  { %v803_v34 = vpop.f32.mrf.mxu0 }
0x12fc   :  { %v805_v35 = vpack.c.bf16 %v789_v33, %v789_v33  ;;  %v2823_v33 = vld [vmem:[#allocation14 + $0x1b4] sm:$0xf0]  ;;  %v2389_v34 = vor.u32 %v2804_v29, %v2386_v31 }
0x12fe   :  { %1013 = vmatmul.bf16.vlgmr.msrb.gmra.mxu1 %v805_v35  ;;  %1039 = vmatmul.bf16.vlgmr.msrb.gmra.mxu3 %v805_v35  ;;  %v2457_v35 = vor.u32 %v2823_v33, %v2456_v32 }
0x12ff   :  { %1308 = vmatpush.bf16.msra.mxu3 %v2389_v34  ;;  %1283 = vmatpush.bf16.msra.mxu1 %v2377_v42  ;;  %v2618_v42 = vor.u32 %v2863_v40, %v2617_v39  ;;  %v2579_v39 = vld [vmem:[#allocation14 + $0x2a8] sm:$0xf0]  ;;  %v2513_v40 = vld [vmem:[#allocation14 + $0x220] sm:$0xf] }
0x1300   :  { %1294 = vmatpush.bf16.msra.mxu2 %v2457_v35 }
0x1301   :  { %v790_v61 = vpop.f32.mrf.mxu3 }
0x1302   :  { %v2822_v61 = vld [vmem:[#allocation14 + $0x1b4] sm:$0xf] }
0x1303   :  { %v2461_v38 = vor.u32 %v2822_v61, %v2458_v36  ;;  %1309 = vmatpush.bf16.msra.mxu3 %v2381_v43  ;;  %1284 = vmatpush.bf16.msra.mxu1 %v2369_v54  ;;  %v2619_v43 = vld [vmem:[#allocation14 + $0x2f8] sm:$0xf0]  ;;  %v2611_v54 = vld [vmem:[#allocation14 + $0x2e8] sm:$0xf0] }
0x1304   :  { %1295 = vmatpush.bf16.msra.mxu2 %v2449_v46  ;;  %v2622_v44 = vor.u32 %v2862_v41, %v2619_v43  ;;  %v2609_v46 = vld [vmem:[#allocation14 + $0x2e0] sm:$0xf]  ;;  %v2614_v55 = vor.u32 %v2860_v53, %v2611_v54  ;;  %v2569_v43 = vld [vmem:[#allocation14 + $0x290] sm:$0xf] }
0x1305   :  { %1320 = vmatpush.bf16.msrb.mxu0 %v2461_v38  ;;  %v2610_v51 = vor.u32 %v2861_v48, %v2609_v46  ;;  %v2836_v46 = vld [vmem:[#allocation14 + $0x224] sm:$0xf]  ;;  %v2850_v48 = vld [vmem:[#allocation14 + $0x294] sm:$0xf]  ;;  %v2561_v54 = vld [vmem:[#allocation14 + $0x280] sm:$0xf] }
0x1307   :  { %1310 = vmatpush.bf16.msra.mxu3 %v2373_v58  ;;  %1549 = vmatpush.bf16.msrb.mxu1 %v2554_v47  ;;  %v2601_v58 = vld [vmem:[#allocation14 + $0x2d0] sm:$0xf]  ;;  %v2515_v47 = vld [vmem:[#allocation14 + $0x228] sm:$0xf0] }
0x1308   :  { %1296 = vmatpush.bf16.msra.mxu2 %v2441_v59  ;;  %v2546_v59 = vor.u32 %v2845_v57, %v2545_v56  ;;  %v2834_v56 = vld [vmem:[#allocation14 + $0x214] sm:$0xf] }
0x1309   :  { %1321 = vmatpush.bf16.msrb.mxu0 %v2453_v50  ;;  %v2555_v50 = vld [vmem:[#allocation14 + $0x278] sm:$0xf0] }
0x130a   :  { %v2558_v52 = vor.u32 %v2846_v49, %v2555_v50  ;;  %v2518_v49 = vor.u32 %v2836_v46, %v2515_v47  ;;  %v2571_v50 = vld [vmem:[#allocation14 + $0x298] sm:$0xf0]  ;;  %v2674_v47 = vld [vmem:[#allocation14 + $0x360] sm:$0xf] }
0x130b   :  { %1550 = vmatpush.bf16.msrb.mxu1 %v2546_v59  ;;  %v2574_v53 = vor.u32 %v2850_v48, %v2571_v50  ;;  %v2848_v59 = vld [vmem:[#allocation14 + $0x284] sm:$0xf]  ;;  %v2877_v48 = vld [vmem:[#allocation14 + $0x364] sm:$0xf0] }
0x130c   :  { %1297 = vmatpush.bf16.msra.mxu2 %v2433_v4  ;;  %1575 = vmatpush.bf16.msrb.mxu3 %v2558_v52  ;;  %v2835_v52 = vld [vmem:[#allocation14 + $0x214] sm:$0xf0]  ;;  %v2675_v50 = vor.u32 %v2877_v48, %v2674_v47 }
0x130d   :  { %1322 = vmatpush.bf16.msrb.mxu0 %v2445_v60  ;;  %v2859_v60 = vld [vmem:[#allocation14 + $0x2d4] sm:$0xf0] }
0x130e   :  { %v2602_v0 = vor.u32 %v2859_v60, %v2601_v58  ;;  %v2507_v58 = vld [vmem:[#allocation14 + $0x218] sm:$0xf0]  ;;  %v2563_v60 = vld [vmem:[#allocation14 + $0x288] sm:$0xf0] }
0x1310   :  { %1562 = vmatpush.bf16.msrb.mxu2 %v2618_v42  ;;  %v2837_v42 = vld [vmem:[#allocation14 + $0x224] sm:$0xf0] }
0x1311   :  { %1323 = vmatpush.bf16.msrb.mxu0 %v2437_v7  ;;  %v2843_v7 = vld [vmem:[#allocation14 + $0x254] sm:$0xf0]  ;;  %v2514_v45 = vor.u32 %v2837_v42, %v2513_v40  ;;  %v2682_v42 = vld [vmem:[#allocation14 + $0x370] sm:$0xf] }
0x1314   :  { %1563 = vmatpush.bf16.msrb.mxu2 %v2610_v51  ;;  %v2505_v51 = vld [vmem:[#allocation14 + $0x210] sm:$0xf] }
0x1315   :  { %1588 = vmatpush.bf16.msra.mxu0 %v2622_v44  ;;  %v2851_v44 = vld [vmem:[#allocation14 + $0x294] sm:$0xf0]  ;;  %v2506_v57 = vor.u32 %v2835_v52, %v2505_v51  ;;  %v2676_v51 = vld [vmem:[#allocation14 + $0x368] sm:$0xf0] }
0x1316   :  { %v2570_v9 = vor.u32 %v2851_v44, %v2569_v43  ;;  %v2879_v43 = vld [vmem:[#allocation14 + $0x374] sm:$0xf0]  ;;  %v2878_v44 = vld [vmem:[#allocation14 + $0x374] sm:$0xf] }
0x1318   :  { %1564 = vmatpush.bf16.msrb.mxu2 %v2602_v0  ;;  %v2566_v0 = vor.u32 %v2848_v59, %v2563_v60  ;;  %v2666_v59 = vld [vmem:[#allocation14 + $0x350] sm:$0xf]  ;;  %v2875_v60 = vld [vmem:[#allocation14 + $0x354] sm:$0xf0] }
0x1319   :  { %1589 = vmatpush.bf16.msra.mxu0 %v2614_v55  ;;  %v2849_v55 = vld [vmem:[#allocation14 + $0x284] sm:$0xf0] }
0x1375   :  { %v1053_v62 = vpop.f32.mrf.mxu0 }
0x137b   :  { %v1014_v8 = vpop.f32.mrf.mxu1  ;;  %v1027_v10 = vpop.f32.mrf.mxu2 }
0x137c   :  { %v1015_v11 = vadd.f32 %v1014_v8, %v841_v3  ;;  %v2603_v3 = vld [vmem:[#allocation14 + $0x2d8] sm:$0xf0]  ;;  %v2593_v8 = vld [vmem:[#allocation14 + $0x2c0] sm:$0xf] }
0x137d   :  { %v1055_v6 = vpop.f32.mrf.mxu0  ;;  %v2606_v4 = vor.u32 %v2858_v2, %v2603_v3  ;;  %v2497_v2 = vld [vmem:[#allocation14 + $0x200] sm:$0xf]  ;;  %v2833_v3 = vld [vmem:[#allocation14 + $0x204] sm:$0xf0] }
0x137e   :  { %v1028_v12 = vadd.f32 %v1027_v10, %v1015_v11  ;;  %v2538_v10 = vor.u32 %v2843_v7, %v2537_v5  ;;  %v2857_v11 = vld [vmem:[#allocation14 + $0x2c4] sm:$0xf0]  ;;  %v2842_v6 = vld [vmem:[#allocation14 + $0x254] sm:$0xf]  ;;  %v2498_v5 = vor.u32 %v2833_v3, %v2497_v2  ;;  %v2499_v7 = vld [vmem:[#allocation14 + $0x208] sm:$0xf0] }
0x137f   :  { %1590 = vmatpush.bf16.msra.mxu0 %v2606_v4  ;;  %v2832_v4 = vld [vmem:[#allocation14 + $0x204] sm:$0xf]  ;;  %v2738_v2 = vld [vmem:[#allocation14 + $0x3e0] sm:$0xf]  ;;  %v2893_v3 = vld [vmem:[#allocation14 + $0x3e4] sm:$0xf0] }
0x1380   :  { %v1059_v14 = vmul.f32 0.044715, %v1028_v12  ;;  %v1057_v31 = vmul.f32 0.5, %v1028_v12  ;;  %1551 = vmatpush.bf16.msrb.mxu1 %v2538_v10  ;;  %v2502_v10 = vor.u32 %v2832_v4, %v2499_v7  ;;  %v2892_v4 = vld [vmem:[#allocation14 + $0x3e4] sm:$0xf] }
0x1381   :  { %v1040_v15 = vpop.f32.mrf.mxu3  ;;  %v2740_v7 = vld [vmem:[#allocation14 + $0x3e8] sm:$0xf0] }
0x1382   :  { %v1061_v16 = vmul.f32 %v1059_v14, %v1028_v12  ;;  %v1041_v17 = vadd.f32 %v1040_v15, %v842_v13  ;;  %v2594_v13 = vor.u32 %v2857_v11, %v2593_v8  ;;  %v2856_v15 = vld [vmem:[#allocation14 + $0x2c4] sm:$0xf]  ;;  %v2365_v8 = vld [vmem:[%s3513_s7 + $0x2] sm:$0x3] }
0x1383   :  { %v1016_v18 = vpop.f32.mrf.mxu1  ;;  %v1029_v19 = vpop.f32.mrf.mxu2  ;;  %v1114_v11 = vperm.slane %v2365_v8, 1 }
0x1384   :  { %v1063_v20 = vmul.f32 %v1061_v16, %v1028_v12  ;;  %v1054_v21 = vadd.f32 %v1053_v62, %v1041_v17  ;;  %v2844_v62 = vld [vmem:[#allocation14 + $0x264] sm:$0xf]  ;;  %v2595_v16 = vld [vmem:[#allocation14 + $0x2c8] sm:$0xf0]  ;;  %1565 = vmatpush.bf16.msrb.mxu2 %v2594_v13  ;;  %v2529_v18 = vld [vmem:[#allocation14 + $0x240] sm:$0xf] }
0x1385   :  { %v2550_v1 = vor.u32 %v2844_v62, %v2547_v63  ;;  %v2598_v17 = vor.u32 %v2856_v15, %v2595_v16  ;;  %v2841_v19 = vld [vmem:[#allocation14 + $0x244] sm:$0xf0]  ;;  %v2562_v62 = vor.u32 %v2849_v55, %v2561_v54  ;;  %v2510_v63 = vor.u32 %v2834_v56, %v2507_v58  ;;  %v2895_v54 = vld [vmem:[#allocation14 + $0x3f4] sm:$0xf0]  ;;  %v2894_v55 = vld [vmem:[#allocation14 + $0x3f4] sm:$0xf] }
0x1386   :  { %v1060_v22 = vmul.f32 0.044715, %v1054_v21  ;;  %v1065_v23 = vadd.f32 %v1063_v20, %v1028_v12  ;;  %v1058_v61 = vmul.f32 0.5, %v1054_v21  ;;  %v2539_v12 = vld [vmem:[#allocation14 + $0x258] sm:$0xf0]  ;;  %v1113_v13 = vperm.slane %v2365_v8, 0 }
0x1387   :  { %1576 = vmatpush.bf16.msrb.mxu3 %v2550_v1  ;;  %v2542_v14 = vor.u32 %v2842_v6, %v2539_v12  ;;  %v2585_v20 = vld [vmem:[#allocation14 + $0x2b0] sm:$0xf]  ;;  %1591 = vmatpush.bf16.msra.mxu0 %v2598_v17  ;;  %v2743_v8 = vor.u32 %v2892_v4, %v2740_v7  ;;  %v2690_v7 = vld [vmem:[#allocation14 + $0x380] sm:$0xf] }
0x1388   :  { %v1062_v24 = vmul.f32 %v1060_v22, %v1054_v21  ;;  %v1067_v25 = vmul.f32 0.7978846, %v1065_v23  ;;  %v2855_v22 = vld [vmem:[#allocation14 + $0x2b4] sm:$0xf0]  ;;  %v2840_v23 = vld [vmem:[#allocation14 + $0x244] sm:$0xf] }
0x1389   :  { %v1042_v26 = vpop.f32.mrf.mxu3  ;;  %v2494_v4 = vld [vmem:[%s3513_s7 + $0x4] sm:$0x3] }
0x138a   :  { %2991 = vtanh.f32 %v1067_v25  ;;  %v1064_v27 = vmul.f32 %v1062_v24, %v1054_v21  ;;  %v2531_v24 = vld [vmem:[#allocation14 + $0x248] sm:$0xf0]  ;;  %v2586_v25 = vor.u32 %v2855_v22, %v2585_v20 }
0x138b   :  { %1577 = vmatpush.bf16.msrb.mxu3 %v2542_v14  ;;  %v2534_v26 = vor.u32 %v2840_v23, %v2531_v24 }
0x138c   :  { %v1066_v28 = vadd.f32 %v1064_v27, %v1054_v21  ;;  %v2530_v21 = vor.u32 %v2841_v19, %v2529_v18  ;;  %v2854_v27 = vld [vmem:[#allocation14 + $0x2b4] sm:$0xf]  ;;  %1566 = vmatpush.bf16.msrb.mxu2 %v2586_v25 }
0x138e   :  { %v1068_v29 = vmul.f32 0.7978846, %v1066_v28  ;;  %v2587_v28 = vld [vmem:[#allocation14 + $0x2b8] sm:$0xf0]  ;;  %1552 = vmatpush.bf16.msrb.mxu1 %v2530_v21 }
0x138f   :  { %1578 = vmatpush.bf16.msrb.mxu3 %v2534_v26 }
0x1390   :  { %v2992_v30 = vpop.eup %2991  ;;  %2993 = vtanh.f32 %v1068_v29  ;;  %v2590_v29 = vor.u32 %v2854_v27, %v2587_v28 }
0x1391   :  { %v1071_v32 = vadd.f32 1.0, %v2992_v30  ;;  %v2521_v30 = vld [vmem:[#allocation14 + $0x230] sm:$0xf] }
0x1392   :  { %1592 = vmatpush.bf16.msra.mxu0 %v2590_v29 }
0x1393   :  { %v1073_v33 = vmul.f32 %v1071_v32, %v1057_v31  ;;  %v2839_v31 = vld [vmem:[#allocation14 + $0x234] sm:$0xf0]  ;;  %v2577_v32 = vld [vmem:[#allocation14 + $0x2a0] sm:$0xf] }
0x1395   :  { %v1075_v34 = vpack.c.bf16 %v1073_v33, %v1073_v33  ;;  %v2522_v33 = vor.u32 %v2839_v31, %v2521_v30 }
0x1396   :  { %v2994_v35 = vpop.eup %2993 }
0x1397   :  { %1285 = vmatmul.bf16.vlgmr.msra.gmra.mxu1 %v1075_v34  ;;  %1311 = vmatmul.bf16.vlgmr.msra.gmra.mxu3 %v1075_v34  ;;  %v1072_v36 = vadd.f32 1.0, %v2994_v35  ;;  %v2853_v34 = vld [vmem:[#allocation14 + $0x2a4] sm:$0xf0]  ;;  %v2838_v35 = vld [vmem:[#allocation14 + $0x234] sm:$0xf] }
0x1398   :  { %1553 = vmatpush.bf16.msrb.mxu1 %v2522_v33 }
0x1399   :  { %v1074_v37 = vmul.f32 %v1072_v36, %v1058_v61  ;;  %v2523_v61 = vld [vmem:[#allocation14 + $0x238] sm:$0xf0]  ;;  %v2578_v36 = vor.u32 %v2853_v34, %v2577_v32 }
0x139b   :  { %v1076_v38 = vpack.c.bf16 %v1074_v37, %v1074_v37  ;;  %v2526_v37 = vor.u32 %v2838_v35, %v2523_v61  ;;  %1567 = vmatpush.bf16.msrb.mxu2 %v2578_v36 }
0x139c   :  { %1554 = vmatpush.bf16.msrb.mxu1 %v2514_v45  ;;  %v2683_v45 = vor.u32 %v2879_v43, %v2682_v42  ;;  %v2716_v42 = vld [vmem:[#allocation14 + $0x3b8] sm:$0xf0]  ;;  %v2634_v43 = vld [vmem:[#allocation14 + $0x310] sm:$0xf] }
0x139d   :  { %1298 = vmatmul.bf16.vlgmr.msra.gmra.mxu2 %v1076_v38  ;;  %1324 = vmatmul.bf16.vlgmr.msrb.gmra.mxu0 %v1076_v38  ;;  %v2852_v38 = vld [vmem:[#allocation14 + $0x2a4] sm:$0xf] }
0x139e   :  { %v2582_v41 = vor.u32 %v2852_v38, %v2579_v39  ;;  %1579 = vmatpush.bf16.msrb.mxu3 %v2526_v37 }
0x139f   :  { %1568 = vmatpush.bf16.msrb.mxu2 %v2570_v9  ;;  %v2684_v9 = vld [vmem:[#allocation14 + $0x378] sm:$0xf0] }
0x13a0   :  { %1593 = vmatpush.bf16.msra.mxu0 %v2582_v41  ;;  %1555 = vmatpush.bf16.msrb.mxu1 %v2506_v57  ;;  %v2687_v46 = vor.u32 %v2878_v44, %v2684_v9  ;;  %v2748_v57 = vld [vmem:[#allocation14 + $0x3f8] sm:$0xf0]  ;;  %v2866_v9 = vld [vmem:[#allocation14 + $0x314] sm:$0xf] }
0x13a1   :  { %v2751_v58 = vor.u32 %v2894_v55, %v2748_v57  ;;  %v2865_v55 = vld [vmem:[#allocation14 + $0x304] sm:$0xf0]  ;;  %v2864_v57 = vld [vmem:[#allocation14 + $0x304] sm:$0xf] }
0x13a2   :  { %1580 = vmatpush.bf16.msrb.mxu3 %v2518_v49  ;;  %v2876_v49 = vld [vmem:[#allocation14 + $0x364] sm:$0xf] }
0x13a3   :  { %1569 = vmatpush.bf16.msrb.mxu2 %v2562_v62  ;;  %v2679_v52 = vor.u32 %v2876_v49, %v2676_v51  ;;  %v2874_v62 = vld [vmem:[#allocation14 + $0x354] sm:$0xf]  ;;  %v2706_v49 = vld [vmem:[#allocation14 + $0x3a0] sm:$0xf]  ;;  %v2884_v51 = vld [vmem:[#allocation14 + $0x3a4] sm:$0xf] }
0x13a4   :  { %1594 = vmatpush.bf16.msra.mxu0 %v2574_v53  ;;  %1556 = vmatpush.bf16.msrb.mxu1 %v2498_v5  ;;  %v2746_v53 = vld [vmem:[#allocation14 + $0x3f0] sm:$0xf]  ;;  %v2739_v5 = vor.u32 %v2893_v3, %v2738_v2 }
0x13a5   :  { %v2747_v56 = vor.u32 %v2895_v54, %v2746_v53  ;;  %v2708_v53 = vld [vmem:[#allocation14 + $0x3a8] sm:$0xf0]  ;;  %v2626_v54 = vld [vmem:[#allocation14 + $0x300] sm:$0xf] }
0x13a6   :  { %1581 = vmatpush.bf16.msrb.mxu3 %v2510_v63  ;;  %v2667_v63 = vor.u32 %v2875_v60, %v2666_v59  ;;  %v2698_v59 = vld [vmem:[#allocation14 + $0x390] sm:$0xf]  ;;  %v2627_v60 = vor.u32 %v2865_v55, %v2626_v54 }
0x13a7   :  { %1834 = vmatpush.bf16.msra.mxu2 %v2747_v56  ;;  %v2711_v56 = vor.u32 %v2884_v51, %v2708_v53 }
0x13a8   :  { %1595 = vmatpush.bf16.msra.mxu0 %v2566_v0  ;;  %1821 = vmatpush.bf16.msra.mxu1 %v2683_v45  ;;  %v2668_v0 = vld [vmem:[#allocation14 + $0x358] sm:$0xf0]  ;;  %v2867_v45 = vld [vmem:[#allocation14 + $0x314] sm:$0xf0] }
0x13a9   :  { %v2635_v47 = vor.u32 %v2867_v45, %v2634_v43  ;;  %v2897_v45 = vld [vmem:[#allocation15 + $0x8] sm:$0xff] }
0x13aa   :  { %1582 = vmatpush.bf16.msrb.mxu3 %v2502_v10  ;;  %v2658_v10 = vld [vmem:[#allocation14 + $0x340] sm:$0xf] }
0x13ab   :  { %1835 = vmatpush.bf16.msra.mxu2 %v2739_v5 }
0x13ac   :  { %1822 = vmatpush.bf16.msra.mxu1 %v2675_v50  ;;  %1860 = vmatpush.bf16.msrb.mxu0 %v2751_v58  ;;  %v2885_v50 = vld [vmem:[#allocation14 + $0x3a4] sm:$0xf0]  ;;  %v2628_v58 = vld [vmem:[#allocation14 + $0x308] sm:$0xf0] }
0x13ae   :  { %1847 = vmatpush.bf16.msra.mxu3 %v2687_v46  ;;  %v2636_v46 = vld [vmem:[#allocation14 + $0x318] sm:$0xf0] }
0x13af   :  { %v2639_v48 = vor.u32 %v2866_v9, %v2636_v46  ;;  %v2896_v9 = vld [vmem:[#allocation15] sm:$0xff] }
0x13b0   :  { %1823 = vmatpush.bf16.msra.mxu1 %v2667_v63  ;;  %1861 = vmatpush.bf16.msrb.mxu0 %v2743_v8  ;;  %v2882_v63 = vld [vmem:[#allocation14 + $0x394] sm:$0xf]  ;;  %v2881_v8 = vld [vmem:[#allocation14 + $0x384] sm:$0xf0] }
0x13b2   :  { %1848 = vmatpush.bf16.msra.mxu3 %v2679_v52  ;;  %v2707_v52 = vor.u32 %v2885_v50, %v2706_v49 }
0x1414   :  { %v1286_v1 = vpop.f32.mrf.mxu1 }
0x1415   :  { %v1287_v17 = vadd.f32 %v1286_v1, %v1113_v13  ;;  %v2671_v1 = vor.u32 %v2874_v62, %v2668_v0  ;;  %v2660_v13 = vld [vmem:[#allocation14 + $0x348] sm:$0xf0]  ;;  %v2883_v62 = vld [vmem:[#allocation14 + $0x394] sm:$0xf0]  ;;  %v2700_v0 = vld [vmem:[#allocation14 + $0x398] sm:$0xf0] }
0x1416   :  { %v2699_v2 = vor.u32 %v2883_v62, %v2698_v59  ;;  %v2703_v3 = vor.u32 %v2882_v63, %v2700_v0 }
0x1417   :  { %1849 = vmatpush.bf16.msra.mxu3 %v2671_v1  ;;  %v2631_v1 = vor.u32 %v2864_v57, %v2628_v58 }
0x141a   :  { %v1312_v6 = vpop.f32.mrf.mxu3  ;;  %v1325_v12 = vpop.f32.mrf.mxu0 }
0x141b   :  { %v1313_v14 = vadd.f32 %v1312_v6, %v1114_v11  ;;  %v2873_v11 = vld [vmem:[#allocation14 + $0x344] sm:$0xf0]  ;;  %v2872_v6 = vld [vmem:[#allocation14 + $0x344] sm:$0xf] }
0x141c   :  { %v1288_v15 = vpop.f32.mrf.mxu1 }
0x141d   :  { %v1326_v16 = vadd.f32 %v1325_v12, %v1313_v14  ;;  %v2659_v12 = vor.u32 %v2873_v11, %v2658_v10  ;;  %v2663_v14 = vor.u32 %v2872_v6, %v2660_v13  ;;  %v2730_v15 = vld [vmem:[#allocation14 + $0x3d0] sm:$0xf]  ;;  %v2880_v10 = vld [vmem:[#allocation14 + $0x384] sm:$0xf]  ;;  %v1385_v11 = vperm.slane %v2494_v4, 0 }
0x141e   :  { %v2691_v6 = vor.u32 %v2881_v8, %v2690_v7  ;;  %v3459_v8 = vld [vmem:[%s3515_s9] ss:$0 sm:$0xff] }
0x141f   :  { %v1332_v18 = vmul.f32 0.044715, %v1326_v16  ;;  %v1330_v34 = vmul.f32 0.5, %v1326_v16  ;;  %1824 = vmatpush.bf16.msra.mxu1 %v2659_v12  ;;  %1850 = vmatpush.bf16.msra.mxu3 %v2663_v14  ;;  %v2692_v12 = vld [vmem:[#allocation14 + $0x388] sm:$0xf0] }
0x1420   :  { %v1299_v19 = vpop.f32.mrf.mxu2  ;;  %v2695_v13 = vor.u32 %v2880_v10, %v2692_v12 }
0x1421   :  { %v1334_v20 = vmul.f32 %v1332_v18, %v1326_v16  ;;  %v1300_v21 = vadd.f32 %v1299_v19, %v1287_v17  ;;  %v2890_v17 = vld [vmem:[#allocation14 + $0x3d4] sm:$0xf]  ;;  %v2732_v19 = vld [vmem:[#allocation14 + $0x3d8] sm:$0xf0] }
0x1422   :  { %v1314_v22 = vpop.f32.mrf.mxu3  ;;  %v1327_v23 = vpop.f32.mrf.mxu0 }
0x1423   :  { %v1336_v24 = vmul.f32 %v1334_v20, %v1326_v16  ;;  %v1331_v25 = vmul.f32 0.044715, %v1300_v21  ;;  %v1329_v38 = vmul.f32 0.5, %v1300_v21  ;;  %v2735_v20 = vor.u32 %v2890_v17, %v2732_v19  ;;  %v2871_v22 = vld [vmem:[#allocation14 + $0x334] sm:$0xf0] }
0x1424   :  { %v2870_v23 = vld [vmem:[#allocation14 + $0x334] sm:$0xf] }
0x1425   :  { %v1333_v26 = vmul.f32 %v1331_v25, %v1300_v21  ;;  %v1338_v27 = vadd.f32 %v1336_v24, %v1326_v16  ;;  %v2891_v16 = vld [vmem:[#allocation14 + $0x3d4] sm:$0xf0]  ;;  %v2652_v25 = vld [vmem:[#allocation14 + $0x338] sm:$0xf0]  ;;  %1862 = vmatpush.bf16.msrb.mxu0 %v2735_v20 }
0x1426   :  { %v2731_v18 = vor.u32 %v2891_v16, %v2730_v15 }
0x1427   :  { %v1335_v28 = vmul.f32 %v1333_v26, %v1300_v21  ;;  %v1340_v29 = vmul.f32 0.7978846, %v1338_v27  ;;  %v2655_v26 = vor.u32 %v2870_v23, %v2652_v25  ;;  %v2722_v27 = vld [vmem:[#allocation14 + $0x3c0] sm:$0xf] }
0x1428   :  { %v1301_v30 = vpop.f32.mrf.mxu2  ;;  %1836 = vmatpush.bf16.msra.mxu2 %v2731_v18  ;;  %v1386_v18 = vperm.slane %v2494_v4, 1 }
0x1429   :  { %2995 = vtanh.f32 %v1340_v29  ;;  %v1337_v31 = vadd.f32 %v1335_v28, %v1300_v21  ;;  %v2650_v21 = vld [vmem:[#allocation14 + $0x330] sm:$0xf]  ;;  %v2889_v28 = vld [vmem:[#allocation14 + $0x3c4] sm:$0xf0]  ;;  %v2888_v29 = vld [vmem:[#allocation14 + $0x3c4] sm:$0xf]  ;;  %1851 = vmatpush.bf16.msra.mxu3 %v2655_v26 }
0x142a   :  { %v2651_v24 = vor.u32 %v2871_v22, %v2650_v21  ;;  %v2723_v30 = vor.u32 %v2889_v28, %v2722_v27 }
0x142b   :  { %v1339_v32 = vmul.f32 0.7978846, %v1337_v31  ;;  %v2724_v31 = vld [vmem:[#allocation14 + $0x3c8] sm:$0xf0] }
0x142c   :  { %1825 = vmatpush.bf16.msra.mxu1 %v2651_v24  ;;  %1837 = vmatpush.bf16.msra.mxu2 %v2723_v30 }
0x142d   :  { %2997 = vtanh.f32 %v1339_v32  ;;  %v2727_v32 = vor.u32 %v2888_v29, %v2724_v31 }
0x142f   :  { %v2996_v33 = vpop.eup %2995  ;;  %1863 = vmatpush.bf16.msrb.mxu0 %v2727_v32 }
0x1430   :  { %v1344_v35 = vadd.f32 1.0, %v2996_v33  ;;  %v2642_v33 = vld [vmem:[#allocation14 + $0x320] sm:$0xf] }
0x1432   :  { %v1346_v61 = vmul.f32 %v1344_v35, %v1330_v34  ;;  %v2869_v34 = vld [vmem:[#allocation14 + $0x324] sm:$0xf0]  ;;  %v2868_v35 = vld [vmem:[#allocation14 + $0x324] sm:$0xf] }
0x1433   :  { %v2998_v36 = vpop.eup %2997 }
0x1434   :  { %v1348_v37 = vpack.c.bf16 %v1346_v61, %v1346_v61  ;;  %v1343_v39 = vadd.f32 1.0, %v2998_v36  ;;  %v2643_v61 = vor.u32 %v2869_v34, %v2642_v33  ;;  %v2644_v36 = vld [vmem:[#allocation14 + $0x328] sm:$0xf0] }
0x1436   :  { %1570 = vmatmul.bf16.vlgmr.msrb.gmra.mxu2 %v1348_v37  ;;  %1596 = vmatmul.bf16.vlgmr.msra.gmra.mxu0 %v1348_v37  ;;  %v1345_v40 = vmul.f32 %v1343_v39, %v1329_v38  ;;  %v2714_v37 = vld [vmem:[#allocation14 + $0x3b0] sm:$0xf]  ;;  %v2887_v38 = vld [vmem:[#allocation14 + $0x3b4] sm:$0xf0]  ;;  %v2647_v39 = vor.u32 %v2868_v35, %v2644_v36 }
0x1437   :  { %1826 = vmatpush.bf16.msra.mxu1 %v2643_v61 }
0x1438   :  { %v1347_v41 = vpack.c.bf16 %v1345_v40, %v1345_v40  ;;  %v2715_v40 = vor.u32 %v2887_v38, %v2714_v37  ;;  %1852 = vmatpush.bf16.msra.mxu3 %v2647_v39 }
0x143a   :  { %1557 = vmatmul.bf16.vlgmr.msrb.gmra.mxu1 %v1347_v41  ;;  %1583 = vmatmul.bf16.vlgmr.msrb.gmra.mxu3 %v1347_v41  ;;  %v2886_v41 = vld [vmem:[#allocation14 + $0x3b4] sm:$0xf] }
0x143b   :  { %v2719_v44 = vor.u32 %v2886_v41, %v2716_v42  ;;  %1838 = vmatpush.bf16.msra.mxu2 %v2715_v40  ;;  %1827 = vmatpush.bf16.msra.mxu1 %v2635_v47  ;;  %v2623_v47 = vld [vmem:[%s3513_s7 + $0x6] sm:$0x3]  ;;  %s3263_s7 = smov 32  }
0x143c   :  { %1853 = vmatpush.bf16.msra.mxu3 %v2639_v48  ;;  %v1658_v48 = vperm.slane %v2623_v47, 1  ;;  %v1657_v51 = vperm.slane %v2623_v47, 0 }
0x143d   :  { %1864 = vmatpush.bf16.msrb.mxu0 %v2719_v44 }
0x143f   :  { %1839 = vmatpush.bf16.msra.mxu2 %v2707_v52  ;;  %1828 = vmatpush.bf16.msra.mxu1 %v2627_v60 }
0x1440   :  { %1854 = vmatpush.bf16.msra.mxu3 %v2631_v1 }
0x1441   :  { %1865 = vmatpush.bf16.msrb.mxu0 %v2711_v56 }
0x1443   :  { %1840 = vmatpush.bf16.msra.mxu2 %v2699_v2  ;;  %1906 = vmatpush.bf16.msrb.mxu1 %v2897_v45 }
0x1444   :  { %1987 = vmatpush.bf16.msrb.mxu3 %v2897_v45 }
0x1445   :  { %1866 = vmatpush.bf16.msrb.mxu0 %v2703_v3 }
0x1447   :  { %1841 = vmatpush.bf16.msra.mxu2 %v2691_v6  ;;  %1907 = vmatpush.bf16.msrb.mxu1 %v2896_v9 }
0x1448   :  { %1988 = vmatpush.bf16.msrb.mxu3 %v2896_v9 }
0x1449   :  { %1867 = vmatpush.bf16.msrb.mxu0 %v2695_v13 }
0x144b   :  { %1949 = vmatpush.bf16.msrb.mxu2 %v2897_v45 }
0x144d   :  { %2025 = vmatpush.bf16.msra.mxu0 %v2897_v45 }
0x144f   :  { %1950 = vmatpush.bf16.msrb.mxu2 %v2896_v9 }
0x1451   :  { %2026 = vmatpush.bf16.msra.mxu0 %v2896_v9 }
0x14b3   :  { %v1597_v5 = vpop.f32.mrf.mxu0 }
0x14b7   :  { %v1558_v14 = vpop.f32.mrf.mxu1 }
0x14b8   :  { %v1559_v15 = vadd.f32 %v1558_v14, %v1385_v11 }
0x14b9   :  { %v1571_v16 = vpop.f32.mrf.mxu2 }
0x14ba   :  { %v1572_v17 = vadd.f32 %v1571_v16, %v1559_v15 }
0x14bb   :  { %v1599_v19 = vpop.f32.mrf.mxu0 }
0x14bc   :  { %v1603_v20 = vmul.f32 0.044715, %v1572_v17  ;;  %v1601_v36 = vmul.f32 0.5, %v1572_v17 }
0x14bd   :  { %v1584_v21 = vpop.f32.mrf.mxu3 }
0x14be   :  { %v1605_v22 = vmul.f32 %v1603_v20, %v1572_v17  ;;  %v1585_v23 = vadd.f32 %v1584_v21, %v1386_v18 }
0x14bf   :  { %v1560_v24 = vpop.f32.mrf.mxu1 }
0x14c0   :  { %v1607_v25 = vmul.f32 %v1605_v22, %v1572_v17  ;;  %v1598_v26 = vadd.f32 %v1597_v5, %v1585_v23 }
0x14c1   :  { %v1573_v27 = vpop.f32.mrf.mxu2 }
0x14c2   :  { %v1604_v28 = vmul.f32 0.044715, %v1598_v26  ;;  %v1609_v29 = vadd.f32 %v1607_v25, %v1572_v17  ;;  %v1602_v41 = vmul.f32 0.5, %v1598_v26  ;;  %v3468_v25 = vld [vmem:[%s3516_s10] ss:$0 sm:$0xff]  ;;  %s3265_s10 = smov 3  }
0x14c4   :  { %v1606_v30 = vmul.f32 %v1604_v28, %v1598_v26  ;;  %v1611_v31 = vmul.f32 0.7978846, %v1609_v29 }
0x14c5   :  { %v1586_v32 = vpop.f32.mrf.mxu3 }
0x14c6   :  { %2999 = vtanh.f32 %v1611_v31  ;;  %v1608_v33 = vmul.f32 %v1606_v30, %v1598_v26 }
0x14c8   :  { %v1610_v34 = vadd.f32 %v1608_v33, %v1598_v26 }
0x14ca   :  { %v1612_v35 = vmul.f32 0.7978846, %v1610_v34 }
0x14cc   :  { %v3000_v61 = vpop.eup %2999  ;;  %3001 = vtanh.f32 %v1612_v35 }
0x14cd   :  { %v1615_v37 = vadd.f32 1.0, %v3000_v61 }
0x14cf   :  { %v1617_v38 = vmul.f32 %v1615_v37, %v1601_v36 }
0x14d1   :  { %v1619_v39 = vpack.c.bf16 %v1617_v38, %v1617_v38 }
0x14d2   :  { %v3002_v40 = vpop.eup %3001 }
0x14d3   :  { %1829 = vmatmul.bf16.vlgmr.msra.gmra.mxu1 %v1619_v39  ;;  %1855 = vmatmul.bf16.vlgmr.msra.gmra.mxu3 %v1619_v39  ;;  %v1616_v42 = vadd.f32 1.0, %v3002_v40 }
0x14d4   :  { %2063 = vmatpush.bf16.msra.mxu1 %v2897_v45  ;;  %2139 = vmatpush.bf16.msra.mxu3 %v2897_v45 }
0x14d5   :  { %v1618_v43 = vmul.f32 %v1616_v42, %v1602_v41 }
0x14d7   :  { %v1620_v44 = vpack.c.bf16 %v1618_v43, %v1618_v43 }
0x14d8   :  { %2064 = vmatpush.bf16.msra.mxu1 %v2896_v9  ;;  %2140 = vmatpush.bf16.msra.mxu3 %v2896_v9 }
0x14d9   :  { %1842 = vmatmul.bf16.vlgmr.msra.gmra.mxu2 %v1620_v44  ;;  %1868 = vmatmul.bf16.vlgmr.msrb.gmra.mxu0 %v1620_v44 }
0x14da   :  { %2101 = vmatpush.bf16.msra.mxu2 %v2897_v45  ;;  %2177 = vmatpush.bf16.msrb.mxu0 %v2897_v45 }
0x14de   :  { %2102 = vmatpush.bf16.msra.mxu2 %v2896_v9  ;;  %2178 = vmatpush.bf16.msrb.mxu0 %v2896_v9 }
0x1550   :  { %v1830_v46 = vpop.f32.mrf.mxu1 }
0x1551   :  { %v1831_v54 = vadd.f32 %v1830_v46, %v1657_v51 }
0x1556   :  { %v1856_v49 = vpop.f32.mrf.mxu3  ;;  %v1869_v50 = vpop.f32.mrf.mxu0 }
0x1557   :  { %v1857_v53 = vadd.f32 %v1856_v49, %v1658_v48 }
0x1558   :  { %v1832_v52 = vpop.f32.mrf.mxu1 }
0x1559   :  { %v1870_v56 = vadd.f32 %v1869_v50, %v1857_v53 }
0x155c   :  { %v1843_v55 = vpop.f32.mrf.mxu2 }
0x155d   :  { %v1844_v57 = vadd.f32 %v1843_v55, %v1831_v54 }
0x155e   :  { %v1858_v58 = vpop.f32.mrf.mxu3  ;;  %v1871_v59 = vpop.f32.mrf.mxu0 }
0x155f   :  { %v1880_v60 = vpack.c.bf16 %v1870_v56, %v1844_v57 }
0x1561   :  { %2760 = vmatmul.msk.bf16.vlgmr.msrb.gmra.mxu1 %vm1896_vm6, %v1880_v60  ;;  %v1936_v62 = vunpack.c.l.b16 %v1880_v60  ;;  %v2052_v1 = vunpack.c.h.b16 %v1880_v60 }
0x1563   :  { %v1937_v63 = vpack.c.b16 %v1936_v62, %v1936_v62  ;;  %v2053_v2 = vpack.c.b16 %v2052_v1, %v2052_v1 }
0x1564   :  { %v1845_v0 = vpop.f32.mrf.mxu2 }
0x1565   :  { %2014 = vrot.lane.b32.xlu1 %v1937_v63, %s3263_s7  ;;  %1976 = vrot.lane.b32.xlu0 %v1937_v63, %s3257_s21 }
0x1566   :  { %1938 = vrot.lane.b32.xlu2 %v1937_v63, %s3264_s28 }
0x156d   :  { %2166 = vrot.lane.b32.xlu1 %v2053_v2, %s3263_s7  ;;  %2128 = vrot.lane.b32.xlu0 %v2053_v2, %s3257_s21 }
0x156e   :  { %2090 = vrot.lane.b32.xlu2 %v2053_v2, %s3264_s28 }
0x1571   :  { %2764 = vmatmul.msk.bf16.vlgmr.msra.gmra.mxu1 %vm1896_vm6, %v2053_v2 }
0x15c0   :  { %v1939_v3 = vpop.permute.xlu2 %1938 }
0x15c1   :  { %2761 = vmatmul.msk.bf16.vlgmr.msrb.gmra.mxu2 %vm1896_vm6, %v1939_v3 }
0x15c8   :  { %v2091_v4 = vpop.permute.xlu2 %2090 }
0x15d1   :  { %2765 = vmatmul.msk.bf16.vlgmr.msra.gmra.mxu2 %vm1896_vm6, %v2091_v4 }
0x15d7   :  { %v2015_v5 = vpop.permute.xlu1 %2014  ;;  %v1977_v7 = vpop.permute.xlu0 %1976 }
0x15d8   :  { %2762 = vmatmul.msk.bf16.vlgmr.msrb.gmra.mxu3 %vm1896_vm6, %v1977_v7  ;;  %2763 = vmatmul.msk.bf16.vlgmr.msra.gmra.mxu0 %vm1896_vm6, %v2015_v5 }
0x15de   :  { %v1909_v10 = vpop.f32.mrf.mxu1 }
0x15df   :  { %v1910_v11 = vadd.f32 %v3459_v8, %v1909_v10  ;;  %v2167_v15 = vpop.permute.xlu1 %2166  ;;  %v2129_v16 = vpop.permute.xlu0 %2128 }
0x15e1   :  { %v1914_v6 = vmul.f32 0.044715, %v1910_v11  ;;  %v1913_v23 = vmul.f32 0.5, %v1910_v11 }
0x15e3   :  { %v1915_v12 = vmul.f32 %v1914_v6, %v1910_v11 }
0x15e5   :  { %v1916_v13 = vmul.f32 %v1915_v12, %v1910_v11  ;;  %v3478_v12 = vld [vmem:[#allocation2] ss:$0 sm:$0xff] }
0x15e6   :  { %v1911_v14 = vpop.f32.mrf.mxu1 }
0x15e7   :  { %v1917_v17 = vadd.f32 %v1916_v13, %v1910_v11 }
0x15e8   :  { %2766 = vmatmul.msk.bf16.vlgmr.msra.gmra.mxu3 %vm1896_vm6, %v2129_v16  ;;  %2767 = vmatmul.msk.bf16.vlgmr.msrb.gmra.mxu0 %vm1896_vm6, %v2167_v15 }
0x15e9   :  { %v1918_v18 = vmul.f32 0.7978846, %v1917_v17 }
0x15eb   :  { %3003 = vtanh.f32 %v1918_v18 }
0x15ee   :  { %v2066_v19 = vpop.f32.mrf.mxu1 }
0x15ef   :  { %v2067_v20 = vadd.f32 %v3459_v8, %v2066_v19 }
0x15f1   :  { %v3004_v21 = vpop.eup %3003  ;;  %v2071_v22 = vmul.f32 0.044715, %v2067_v20  ;;  %v2070_v35 = vmul.f32 0.5, %v2067_v20 }
0x15f2   :  { %v1920_v24 = vadd.f32 1.0, %v3004_v21 }
0x15f3   :  { %v2072_v26 = vmul.f32 %v2071_v22, %v2067_v20 }
0x15f4   :  { %v1921_v27 = vmul.f32 %v1920_v24, %v1913_v23 }
0x15f5   :  { %v2073_v28 = vmul.f32 %v2072_v26, %v2067_v20 }
0x15f6   :  { %v2068_v29 = vpop.f32.mrf.mxu1  ;;  %v1925_v30 = vmul.f32 %v3468_v25, %v1921_v27 }
0x15f7   :  { %v2074_v31 = vadd.f32 %v2073_v28, %v2067_v20 }
0x15f8   :  { %v1926_v32 = vsel %vm177_vm0, %v1925_v30, 0.0 }
0x15f9   :  { %1927 = vadd.xlane.f32.xlu2 %v1926_v32  ;;  %v2075_v33 = vmul.f32 0.7978846, %v2074_v31 }
0x15fb   :  { %3005 = vtanh.f32 %v2075_v33 }
0x1601   :  { %v3006_v34 = vpop.eup %3005 }
0x1602   :  { %v2077_v61 = vadd.f32 1.0, %v3006_v34 }
0x1604   :  { %v2078_v36 = vmul.f32 %v2077_v61, %v2070_v35 }
0x1606   :  { %v2079_v37 = vmul.f32 %v3468_v25, %v2078_v36 }
0x1608   :  { %v2080_v38 = vsel %vm177_vm0, %v2079_v37, 0.0 }
0x1609   :  { %2081 = vadd.xlane.f32.xlu1 %v2080_v38 }
0x1644   :  { %v1952_v39 = vpop.f32.mrf.mxu2 }
0x1645   :  { %v1953_v40 = vadd.f32 %v3459_v8, %v1952_v39 }
0x1647   :  { %v1957_v42 = vmul.f32 0.044715, %v1953_v40  ;;  %v1956_v23 = vmul.f32 0.5, %v1953_v40 }
0x1649   :  { %v1958_v43 = vmul.f32 %v1957_v42, %v1953_v40 }
0x164b   :  { %v1959_v46 = vmul.f32 %v1958_v43, %v1953_v40 }
0x164c   :  { %v1954_v41 = vpop.f32.mrf.mxu2 }
0x164d   :  { %v1960_v51 = vadd.f32 %v1959_v46, %v1953_v40 }
0x164f   :  { %v1961_v59 = vmul.f32 0.7978846, %v1960_v51 }
0x1651   :  { %3007 = vtanh.f32 %v1961_v59 }
0x1654   :  { %v2104_v44 = vpop.f32.mrf.mxu2 }
0x1655   :  { %v2105_v45 = vadd.f32 %v3459_v8, %v2104_v44  ;;  %v2028_v9 = vpop.f32.mrf.mxu0 }
0x1656   :  { %v2029_v47 = vadd.f32 %v3459_v8, %v2028_v9 }
0x1657   :  { %v2109_v48 = vmul.f32 0.044715, %v2105_v45  ;;  %v3008_v11 = vpop.eup %3007  ;;  %v2108_v35 = vmul.f32 0.5, %v2105_v45 }
0x1658   :  { %v2033_v49 = vmul.f32 0.044715, %v2029_v47  ;;  %v2032_v13 = vmul.f32 0.5, %v2029_v47  ;;  %v1963_v17 = vadd.f32 1.0, %v3008_v11 }
0x1659   :  { %v2110_v50 = vmul.f32 %v2109_v48, %v2105_v45 }
0x165a   :  { %v2034_v52 = vmul.f32 %v2033_v49, %v2029_v47  ;;  %v1964_v29 = vmul.f32 %v1963_v17, %v1956_v23 }
0x165b   :  { %v1990_v53 = vpop.f32.mrf.mxu3  ;;  %v2111_v54 = vmul.f32 %v2110_v50, %v2105_v45 }
0x165c   :  { %v1991_v55 = vadd.f32 %v3459_v8, %v1990_v53  ;;  %v2106_v56 = vpop.f32.mrf.mxu2  ;;  %v2035_v57 = vmul.f32 %v2034_v52, %v2029_v47  ;;  %v1965_v34 = vmul.f32 %v3468_v25, %v1964_v29 }
0x165d   :  { %v2030_v58 = vpop.f32.mrf.mxu0  ;;  %v2112_v63 = vadd.f32 %v2111_v54, %v2105_v45 }
0x165e   :  { %v1995_v60 = vmul.f32 0.044715, %v1991_v55  ;;  %v2036_v62 = vadd.f32 %v2035_v57, %v2029_v47  ;;  %v1994_v27 = vmul.f32 0.5, %v1991_v55  ;;  %v1966_v37 = vsel %vm177_vm0, %v1965_v34, 0.0 }
0x165f   :  { %v2113_v4 = vmul.f32 0.7978846, %v2112_v63 }
0x1660   :  { %v1996_v0 = vmul.f32 %v1995_v60, %v1991_v55  ;;  %v2037_v1 = vmul.f32 0.7978846, %v2036_v62 }
0x1662   :  { %3009 = vtanh.f32 %v2037_v1  ;;  %v1997_v2 = vmul.f32 %v1996_v0, %v1991_v55 }
0x1663   :  { %v1992_v3 = vpop.f32.mrf.mxu3  ;;  %3011 = vtanh.f32 %v2113_v4 }
0x1664   :  { %v1998_v5 = vadd.f32 %v1997_v2, %v1991_v55 }
0x1665   :  { %v2180_v7 = vpop.f32.mrf.mxu0 }
0x1666   :  { %v1999_v10 = vmul.f32 0.7978846, %v1998_v5  ;;  %v2181_v9 = vadd.f32 %v3459_v8, %v2180_v7 }
0x1668   :  { %v3010_v6 = vpop.eup %3009  ;;  %3013 = vtanh.f32 %v1999_v10  ;;  %v2185_v50 = vmul.f32 0.044715, %v2181_v9  ;;  %v2184_v3 = vmul.f32 0.5, %v2181_v9 }
0x1669   :  { %v2039_v14 = vadd.f32 1.0, %v3010_v6  ;;  %v3012_v19 = vpop.eup %3011 }
0x166a   :  { %v2115_v31 = vadd.f32 1.0, %v3012_v19  ;;  %v2186_v53 = vmul.f32 %v2185_v50, %v2181_v9 }
0x166b   :  { %v2142_v15 = vpop.f32.mrf.mxu3  ;;  %v2040_v16 = vmul.f32 %v2039_v14, %v2032_v13 }
0x166c   :  { %v1928_v18 = vpop.xlane.xlu2 %1927  ;;  %v2116_v36 = vmul.f32 %v2115_v31, %v2108_v35  ;;  %v2143_v44 = vadd.f32 %v3459_v8, %v2142_v15  ;;  %v2187_v8 = vmul.f32 %v2186_v53, %v2181_v9 }
0x166d   :  { %v1932_v20 = vadd.f32 %v3478_v12, %v1928_v18  ;;  %v2182_v21 = vpop.f32.mrf.mxu0  ;;  %v2041_v22 = vmul.f32 %v3468_v25, %v2040_v16 }
0x166e   :  { %v3014_v24 = vpop.eup %3013  ;;  %v2117_v38 = vmul.f32 %v3468_v25, %v2116_v36  ;;  %v2147_v47 = vmul.f32 0.044715, %v2143_v44  ;;  %v2188_v57 = vadd.f32 %v2187_v8, %v2181_v9  ;;  %v2146_v0 = vmul.f32 0.5, %v2143_v44 }
0x166f   :  { %1934 = vst.msk [vmem:[#allocation17] sm:$0x3] %vm1933_vm8, %v1932_v20  ;;  %v2042_v26 = vsel %vm177_vm0, %v2041_v22, 0.0  ;;  %v2001_v28 = vadd.f32 1.0, %v3014_v24 }
0x1670   :  { %2043 = vadd.xlane.f32.xlu0 %v2042_v26  ;;  %v2118_v41 = vsel %vm177_vm0, %v2117_v38, 0.0  ;;  %v2148_v51 = vmul.f32 %v2147_v47, %v2143_v44  ;;  %v2189_v59 = vmul.f32 0.7978846, %v2188_v57 }
0x1671   :  { %v2002_v30 = vmul.f32 %v2001_v28, %v1994_v27 }
0x1672   :  { %v2149_v55 = vmul.f32 %v2148_v51, %v2143_v44 }
0x1673   :  { %v2144_v32 = vpop.f32.mrf.mxu3  ;;  %v2003_v33 = vmul.f32 %v3468_v25, %v2002_v30 }
0x1674   :  { %v2150_v56 = vadd.f32 %v2149_v55, %v2143_v44 }
0x1675   :  { %v2004_v61 = vsel %vm177_vm0, %v2003_v33, 0.0 }
0x1676   :  { %2005 = vadd.xlane.f32.xlu1 %v2004_v61  ;;  %v2151_v58 = vmul.f32 0.7978846, %v2150_v56 }
0x1678   :  { %1967 = vadd.xlane.f32.xlu0 %v1966_v37  ;;  %3015 = vtanh.f32 %v2151_v58 }
0x1679   :  { %3017 = vtanh.f32 %v2189_v59 }
0x167c   :  { %v2082_v39 = vpop.xlane.xlu1 %2081 }
0x167d   :  { %v2083_v40 = vadd.f32 %v3478_v12, %v2082_v39 }
0x167e   :  { %2119 = vadd.xlane.f32.xlu1 %v2118_v41  ;;  %v3016_v60 = vpop.eup %3015 }
0x167f   :  { %2085 = vrot.lane.b32.xlu2 %v2083_v40, %s3258_s6  ;;  %v3018_v62 = vpop.eup %3017  ;;  %v2153_v63 = vadd.f32 1.0, %v3016_v60 }
0x1680   :  { %v2191_v1 = vadd.f32 1.0, %v3018_v62 }
0x1681   :  { %v2154_v2 = vmul.f32 %v2153_v63, %v2146_v0 }
0x1682   :  { %v2192_v4 = vmul.f32 %v2191_v1, %v2184_v3 }
0x1683   :  { %v2155_v5 = vmul.f32 %v3468_v25, %v2154_v2 }
0x1684   :  { %v2193_v7 = vmul.f32 %v3468_v25, %v2192_v4 }
0x1685   :  { %v2156_v10 = vsel %vm177_vm0, %v2155_v5, 0.0 }
0x1686   :  { %v2194_v11 = vsel %vm177_vm0, %v2193_v7, 0.0  ;;  %vm2164_vm0 = vcmask 50224  }
0x16d9   :  { %v2086_v6 = vpop.permute.xlu2 %2085 }
0x16e3   :  { %v2044_v42 = vpop.xlane.xlu0 %2043 }
0x16e4   :  { %v2045_v43 = vadd.f32 %v3478_v12, %v2044_v42 }
0x16e6   :  { %2047 = vrot.lane.b32.xlu0 %v2045_v43, %s3265_s10 }
0x16e9   :  { %v2006_v45 = vpop.xlane.xlu1 %2005 }
0x16ea   :  { %v2007_v46 = vadd.f32 %v3478_v12, %v2006_v45 }
0x16eb   :  { %v1968_v48 = vpop.xlane.xlu0 %1967 }
0x16ec   :  { %v1969_v49 = vadd.f32 %v3478_v12, %v1968_v48  ;;  %2009 = vrot.lane.b32.xlu2 %v2007_v46, %s3266_s15 }
0x16ee   :  { %1971 = vrot.lane.b32.xlu1 %v1969_v49, %s3267_s16 }
0x16f1   :  { %v2120_v52 = vpop.xlane.xlu1 %2119 }
0x16f2   :  { %v2121_v54 = vadd.f32 %v3478_v12, %v2120_v52 }
0x16f4   :  { %2123 = vrot.lane.b32.xlu0 %v2121_v54, %s3268_s2 }
0x1715   :  { %2157 = vadd.xlane.f32.xlu2 %v2156_v10 }
0x1718   :  { %2195 = vadd.xlane.f32.xlu1 %v2194_v11 }
0x1746   :  { %v2010_v15 = vpop.permute.xlu2 %2009 }
0x1758   :  { %v2048_v13 = vpop.permute.xlu0 %2047 }
0x1760   :  { %v1972_v14 = vpop.permute.xlu1 %1971 }
0x1761   :  { %1975 = vst.msk [vmem:[#allocation17] sm:$0x3] %vm1974_vm9, %v1972_v14 }
0x1762   :  { %2013 = vst.msk [vmem:[#allocation17] sm:$0x3] %vm2012_vm10, %v2010_v15 }
0x1763   :  { %2051 = vst.msk [vmem:[#allocation17] sm:$0x3] %vm2050_vm11, %v2048_v13 }
0x1764   :  { %2089 = vst.msk [vmem:[#allocation17] sm:$0x3] %vm2088_vm12, %v2086_v6 }
0x1766   :  { %v2124_v25 = vpop.permute.xlu0 %2123 }
0x1767   :  { %2127 = vst.msk [vmem:[#allocation17] sm:$0x3] %vm2126_vm13, %v2124_v25 }
0x1788   :  { %v2158_v16 = vpop.xlane.xlu2 %2157 }
0x1789   :  { %v2159_v17 = vadd.f32 %v3478_v12, %v2158_v16 }
0x178b   :  { %v2196_v18 = vpop.xlane.xlu1 %2195  ;;  %2161 = vrot.lane.b32.xlu1 %v2159_v17, %s3269_s17 }
0x178c   :  { %v2197_v19 = vadd.f32 %v3478_v12, %v2196_v18 }
0x178e   :  { %2199 = vrot.lane.b32.xlu0 %v2197_v19, %s3270_s1 }
0x17fd   :  { %v2162_v20 = vpop.permute.xlu1 %2161 }
0x17fe   :  { %2165 = vst.msk [vmem:[#allocation17] sm:$0x3] %vm2164_vm0, %v2162_v20 }
0x1800   :  { %v2200_v21 = vpop.permute.xlu0 %2199 }
0x1801   :  { %2203 = vst.msk [vmem:[#allocation17] sm:$0x3] %vm2202_vm14, %v2200_v21 }
0x1802   :  { %2214 = dma.vmem_to_hbm [thread:$0]  %s2210_s19, 32, %s2212_s20, [#allocation5]  }
0x1803   :  { %3245 = dma.done.wait [#allocation5], 32  }
0x1804   :  { %3246 = vsyncadd [#allocation5], 4294967264 }
0x1805   :  { %2219 = vsyncpa [#allocation4], 1 }
0x1806   :  { %2220 = vsyncpa [#allocation7], 1 }
0x1807   :  { %2221 = vsyncpa [#allocation10], 1 }
0x1808   :  { %2222 = vsyncpa [#allocation13], 1 }
0x1809   :  { %2223 = vsyncpa [#allocation16], 1 }
0x180a   :  { %2224 = vsyncpa [#allocation5], 1 }

</bundles_post_ra>
